<compile_context>
chip_gen: v6e
topology: v6e:2x2x1
jax: 0.10.0
libtpu: 0.0.40
codegen_flags: <defaults>
</compile_context>

<pallas_src>
import functools

import jax
import jax.numpy as jnp
from jax.experimental import pallas as pl
from jax.experimental.pallas import tpu as pltpu

EPS = 1e-5
LANE = 128


def _round_up(x, m):
    return (x + m - 1) // m * m


def _vmem_limit_bytes():
    """Generation-aware scoped-VMEM limit (~3/4 of physical, capped at 100 MiB)."""
    cap = 64 * 1024 * 1024  # conservative fallback = v7x physical VMEM
    try:
        info = pltpu.get_tpu_info()
        cap = int(getattr(info, "vmem_capacity_bytes", cap)) or cap
    except Exception:
        pass
    return int(min(cap * 3 // 4, 100 * 1024 * 1024))


def _pick_row_tile(n, h, w, cp, coutp, itemsize, vmem_budget, min_steps=8):
    """Largest row tile dividing H that fits the VMEM budget and (if possible)
    yields at least `min_steps` grid steps for pipelining / megacore split."""
    divisors = [d for d in range(h, 0, -1) if h % d == 0]

    def step_bytes(th):
        img = 2 * (h + 2) * (w + 2) * cp * itemsize      # double-buffered padded image
        stage = th * w * 3 * cp * itemsize               # per-kh tap matrix
        acc = th * w * coutp * 4                          # f32 accumulator
        outb = 2 * th * w * coutp * itemsize              # double-buffered y tile
        wgt = 9 * cp * coutp * itemsize                   # resident packed weights
        return img + stage + acc + outb + wgt

    fits = [d for d in divisors if step_bytes(d) <= vmem_budget] or [1]
    for d in fits:                      # descending: largest tile with enough steps
        if n * (h // d) >= min_steps:
            return d
    return fits[0]


# ---------------------------------------------------------------------------
# Kernel 1: 3x3 conv (SAME, stride 1), row-tiled, + per-tile BN statistics.
# ---------------------------------------------------------------------------
def _conv3x3_rowtile_kernel(x_ref, w_ref, y_ref, stats_ref, *, th):
    """One (batch, row-tile) grid step.

    x_ref:     (1, H+2, W+2, Cp)  padded image (grid-invariant over row tiles)
    w_ref:     (9*Cp, Coutp)      packed weights, tap-major rows (kh, kw, c)
    y_ref:     (1, th, W, Coutp)  conv output rows [j*th, (j+1)*th)
    stats_ref: (1, 1, 2, Coutp)   per-tile [sum, sum_sq] partial BN statistics
    """
    wp = x_ref.shape[2]
    cp = x_ref.shape[3]
    w = wp - 2
    coutp = y_ref.shape[3]
    row0 = pl.program_id(1) * th

    # 3 accumulating matmuls (one per kernel row), K = 3*Cp each: no 9x-wide
    # im2col buffer, MXU stays deep, and chained `acc + dot(...)` lets Mosaic
    # accumulate in the MXU result buffer (in-place on v7x's MRB).
    acc = None
    for kh in range(3):
        rows = x_ref[0, pl.ds(row0 + kh, th), :, :]                 # (th, W+2, Cp)
        taps = jnp.concatenate([rows[:, kw:kw + w, :] for kw in range(3)],
                               axis=-1).reshape(th * w, 3 * cp)     # (th*W, 3*Cp)
        part = jnp.dot(taps, w_ref[kh * 3 * cp:(kh + 1) * 3 * cp, :],
                       preferred_element_type=jnp.float32)
        acc = part if acc is None else acc + part

    # Single store of the tile (v5e: one vst slot).  Output may be bf16; BN
    # statistics below are taken from the f32 accumulator so they stay exact.
    y_ref[0] = acc.reshape(th, w, coutp).astype(y_ref.dtype)
    ssum = jnp.sum(acc, axis=0, keepdims=True)                       # (1, Coutp)
    ssq = jnp.sum(acc * acc, axis=0, keepdims=True)                  # (1, Coutp)
    stats_ref[0, 0] = jnp.concatenate([ssum, ssq], axis=0)           # (2, Coutp)


def _conv3x3_pass(xpad, w_packed, th, y_dtype, vmem_limit):
    """Row-tiled conv pass.  xpad: (N, H+2, W+2, Cp); returns y (N,H,W,Coutp)
    in y_dtype and per-tile stats (N, ntiles, 2, Coutp) in f32."""
    n, hp, wp, cp = xpad.shape
    h, w = hp - 2, wp - 2
    coutp = w_packed.shape[1]
    ntiles = h // th
    kernel = functools.partial(_conv3x3_rowtile_kernel, th=th)
    return pl.pallas_call(
        kernel,
        grid=(n, ntiles),
        in_specs=[
            # Whole padded image; block index is constant over the row-tile
            # axis, so it is fetched once per image and stays resident.
            pl.BlockSpec((1, hp, wp, cp), lambda i, j: (i, 0, 0, 0)),
            # Packed weights: full array pinned in VMEM (single buffer).
            pl.BlockSpec(memory_space=pltpu.MemorySpace.VMEM),
        ],
        out_specs=(
            pl.BlockSpec((1, th, w, coutp), lambda i, j: (i, j, 0, 0)),
            pl.BlockSpec((1, 1, 2, coutp), lambda i, j: (i, j, 0, 0)),
        ),
        out_shape=(
            jax.ShapeDtypeStruct((n, h, w, coutp), y_dtype),
            jax.ShapeDtypeStruct((n, ntiles, 2, coutp), jnp.float32),
        ),
        compiler_params=pltpu.CompilerParams(
            dimension_semantics=("parallel", "parallel"),
            vmem_limit_bytes=vmem_limit),
    )(xpad, w_packed)


# ---------------------------------------------------------------------------
# Kernel 2: fused BN1-apply + ReLU + SAME zero-padding (produces conv2 input).
# ---------------------------------------------------------------------------
def _bn_relu_pad_kernel(y_ref, scale_ref, shift_ref, o_ref):
    """y_ref (1,H,W,Cp); scale/shift (1,Cp) resident; o_ref (1,H+2,W+2,Cp)."""
    h, w = y_ref.shape[1], y_ref.shape[2]
    scale = scale_ref[...].reshape(1, 1, -1)
    shift = shift_ref[...].reshape(1, 1, -1)
    a = y_ref[0].astype(jnp.float32) * scale + shift
    a = jnp.maximum(a, 0.0).astype(o_ref.dtype)
    # SAME-padding halo must be zero AFTER BN+ReLU (the shift term would make
    # padded zeros nonzero otherwise): zero the whole tile, then write interior.
    o_ref[...] = jnp.zeros(o_ref.shape, o_ref.dtype)
    o_ref[0, 1:h + 1, 1:w + 1, :] = a


def _bn_relu_pad_pass(y, scale, shift, out_dtype, vmem_limit):
    n, h, w, cp = y.shape
    return pl.pallas_call(
        _bn_relu_pad_kernel,
        grid=(n,),
        in_specs=[
            pl.BlockSpec((1, h, w, cp), lambda i: (i, 0, 0, 0)),
            pl.BlockSpec(memory_space=pltpu.MemorySpace.VMEM),
            pl.BlockSpec(memory_space=pltpu.MemorySpace.VMEM),
        ],
        out_specs=pl.BlockSpec((1, h + 2, w + 2, cp), lambda i: (i, 0, 0, 0)),
        out_shape=jax.ShapeDtypeStruct((n, h + 2, w + 2, cp), out_dtype),
        compiler_params=pltpu.CompilerParams(
            dimension_semantics=("parallel",),
            vmem_limit_bytes=vmem_limit),
    )(y, scale, shift)


# ---------------------------------------------------------------------------
# Kernel 3: BN2-apply + residual add + ReLU, large lane-dense row tiles.
# ---------------------------------------------------------------------------
def _bn_add_relu_kernel(y_ref, res_ref, scale_ref, shift_ref, o_ref):
    y = y_ref[...].astype(jnp.float32) * scale_ref[...] + shift_ref[...]
    y = y + res_ref[...].astype(jnp.float32)
    o_ref[...] = jnp.maximum(y, 0.0).astype(o_ref.dtype)


def _bn_add_relu_pass(y_flat, res_flat, scale, shift, out_dtype, vmem_limit):
    m, cp = y_flat.shape
    # Large row tiles (~1024) amortize per-step overhead on this pure-HBM pass;
    # pl.cdiv grid avoids the "single giant block" fallback for awkward M.
    tm = m if m <= 1024 else 1024
    return pl.pallas_call(
        _bn_add_relu_kernel,
        grid=(pl.cdiv(m, tm),),
        in_specs=[
            pl.BlockSpec((tm, cp), lambda i: (i, 0)),
            pl.BlockSpec((tm, cp), lambda i: (i, 0)),
            pl.BlockSpec(memory_space=pltpu.MemorySpace.VMEM),
            pl.BlockSpec(memory_space=pltpu.MemorySpace.VMEM),
        ],
        out_specs=pl.BlockSpec((tm, cp), lambda i: (i, 0)),
        out_shape=jax.ShapeDtypeStruct((m, cp), out_dtype),
        compiler_params=pltpu.CompilerParams(
            dimension_semantics=("parallel",),
            vmem_limit_bytes=vmem_limit),
    )(y_flat, res_flat, scale, shift)


# ---------------------------------------------------------------------------
# Wrapper glue (layout transposes, channel padding, weight packing, BN fold).
# ---------------------------------------------------------------------------
def _pack_conv_weight(w_oihw, cin_p, cout_p, dtype):
    """(Cout, Cin, 3, 3) OIHW -> (9*Cin_p, Cout_p) with tap-major (kh,kw,c) rows."""
    cout, cin, _, _ = w_oihw.shape
    w = jnp.transpose(w_oihw.astype(jnp.float32), (2, 3, 1, 0))     # (3,3,Cin,Cout)
    w = jnp.pad(w, ((0, 0), (0, 0), (0, cin_p - cin), (0, cout_p - cout)))
    return w.reshape(9 * cin_p, cout_p).astype(dtype)


def _bn_scale_shift(stats, gamma_p, beta_p, count):
    """Fold global batch statistics into per-channel scale/shift (tiny, XLA)."""
    tot = jnp.sum(stats, axis=(0, 1))                                # (2, Cp)
    mean = tot[0] / count
    var = jnp.maximum(tot[1] / count - mean * mean, 0.0)             # clamp >= 0
    inv = jax.lax.rsqrt(var + EPS)
    scale = gamma_p * inv
    shift = beta_p - mean * scale
    return (scale.reshape(1, -1).astype(jnp.float32),
            shift.reshape(1, -1).astype(jnp.float32))


def basic_block_forward(x_nchw, params, compute_dtype=jnp.bfloat16):
    """BasicBlock forward: relu(bn2(conv2(relu(bn1(conv1(x))))) + x).

    x_nchw: (N, C, H, W) float32.  Returns (N, planes, H, W) float32.
    compute_dtype: dtype of MXU inputs and of stored conv intermediates
    (bf16 default = MXU-native on every TPU generation); accumulation, BN
    statistics, residual and ReLU math are always f32.
    """
    n, c, h, w = x_nchw.shape
    planes = params["w1"].shape[0]
    assert params["w1"].shape[1] == c
    # Residual `out + x` in the source requires in_planes == planes, stride 1.
    assert planes == c, "BasicBlock residual add requires in_planes == planes"

    cp = _round_up(max(c, planes), LANE)      # lane-dense channel padding
    m = n * h * w
    vmem_limit = _vmem_limit_bytes()
    itemsize = jnp.dtype(compute_dtype).itemsize
    th = _pick_row_tile(n, h, w, cp, cp, itemsize, int(vmem_limit * 0.6))

    x_nhwc = jnp.transpose(x_nchw, (0, 2, 3, 1)).astype(jnp.float32)
    x_cpad = jnp.pad(x_nhwc, ((0, 0), (0, 0), (0, 0), (0, cp - c)))
    x_pad = jnp.pad(x_cpad, ((0, 0), (1, 1), (1, 1), (0, 0))).astype(compute_dtype)

    w1 = _pack_conv_weight(params["w1"], cp, cp, compute_dtype)
    w2 = _pack_conv_weight(params["w2"], cp, cp, compute_dtype)
    g1 = jnp.pad(params["g1"].astype(jnp.float32), (0, cp - planes))
    b1 = jnp.pad(params["b1"].astype(jnp.float32), (0, cp - planes))
    g2 = jnp.pad(params["g2"].astype(jnp.float32), (0, cp - planes))
    b2 = jnp.pad(params["b2"].astype(jnp.float32), (0, cp - planes))

    # conv1 (+ per-tile BN1 statistics)
    y1, s1 = _conv3x3_pass(x_pad, w1, th, compute_dtype, vmem_limit)
    scale1, shift1 = _bn_scale_shift(s1, g1, b1, m)
    # bn1 + relu + SAME-pad fused: writes conv2's padded input directly.
    a1_pad = _bn_relu_pad_pass(y1, scale1, shift1, compute_dtype, vmem_limit)

    # conv2 (+ per-tile BN2 statistics)
    y2, s2 = _conv3x3_pass(a1_pad, w2, th, compute_dtype, vmem_limit)
    scale2, shift2 = _bn_scale_shift(s2, g2, b2, m)
    # bn2 + residual + relu
    out = _bn_add_relu_pass(y2.reshape(m, cp), x_cpad.reshape(m, cp),
                            scale2, shift2, jnp.float32, vmem_limit)

    out = out.reshape(n, h, w, cp)[..., :planes]
    return jnp.transpose(out, (0, 3, 1, 2))


def ref_forward(x_nchw, params):
    """Pure-JAX reference with PyTorch NCHW/OIHW conventions (f32)."""
    def conv(x, wgt):
        return jax.lax.conv_general_dilated(
            x, wgt, (1, 1), ((1, 1), (1, 1)),
            dimension_numbers=("NCHW", "OIHW", "NCHW"))

    def bn(x, g, b):
        mean = jnp.mean(x, axis=(0, 2, 3), keepdims=True)
        var = jnp.mean((x - mean) ** 2, axis=(0, 2, 3), keepdims=True)
        return ((x - mean) * jax.lax.rsqrt(var + EPS)
                * g.reshape(1, -1, 1, 1) + b.reshape(1, -1, 1, 1))

    out = jnp.maximum(bn(conv(x_nchw, params["w1"]), params["g1"], params["b1"]), 0.0)
    out = bn(conv(out, params["w2"]), params["g2"], params["b2"])
    out = out + x_nchw
    return jnp.maximum(out, 0.0)


if __name__ == "__main__":
    key = jax.random.PRNGKey(0)
    kx, k1, k2, kg1, kb1, kg2, kb2 = jax.random.split(key, 7)

    N, C, H, W = 2, 4, 16, 16   # in_planes == planes (no downsample, stride=1)
    planes = 4

    x = jax.random.normal(kx, (N, C, H, W), jnp.float32)
    params = dict(
        w1=0.1 * jax.random.normal(k1, (planes, C, 3, 3), jnp.float32),
        w2=0.1 * jax.random.normal(k2, (planes, planes, 3, 3), jnp.float32),
        g1=1.0 + 0.1 * jax.random.normal(kg1, (planes,), jnp.float32),
        b1=0.1 * jax.random.normal(kb1, (planes,), jnp.float32),
        g2=1.0 + 0.1 * jax.random.normal(kg2, (planes,), jnp.float32),
        b2=0.1 * jax.random.normal(kb2, (planes,), jnp.float32),
    )

    ref = jax.block_until_ready(ref_forward(x, params))

    # f32 compute path (f32 MXU inputs + f32 intermediates): tight check.
    out_f32 = jax.block_until_ready(
        jax.jit(functools.partial(basic_block_forward,
                                  compute_dtype=jnp.float32))(x, params))
    assert out_f32.shape == (N, planes, H, W), out_f32.shape
    err_f32 = float(jnp.max(jnp.abs(out_f32 - ref)))
    assert jnp.allclose(out_f32, ref, atol=5e-4, rtol=5e-4), err_f32

    # Default bf16 path (bf16 MXU inputs + bf16 intermediates, f32 accumulation
    # / BN statistics / residual): loose check.
    out_bf16 = jax.block_until_ready(jax.jit(basic_block_forward)(x, params))
    err_bf16 = float(jnp.max(jnp.abs(out_bf16 - ref)))
    assert jnp.allclose(out_bf16, ref, atol=1.5e-1, rtol=1e-1), err_bf16

    print("KERNEL_OK")
</pallas_src>

<mosaic_0001>
module attributes {stable_mosaic.version = 11 : i64} {
  func.func @_conv3x3_rowtile_kernel(%arg0: i32, %arg1: i32, %arg2: memref<1x18x18x128xf32, #tpu.memory_space<vmem>>, %arg3: memref<1152x128xf32, #tpu.memory_space<vmem>>, %arg4: memref<1x4x16x128xf32, #tpu.memory_space<vmem>>, %arg5: memref<1x1x2x128xf32, #tpu.memory_space<vmem>>) attributes {dimension_semantics = [#tpu.dimension_semantics<parallel>, #tpu.dimension_semantics<parallel>], iteration_bounds = array<i64: 2, 4>, scalar_prefetch = 0 : i64, scratch_operands = 0 : i64, tpu.core_type = #tpu.core_type<tc>, window_params = [{transform_indices = @transform_0, window_bounds = array<i64: 1, 18, 18, 128>}, {pipeline_mode = #tpu.pipeline_mode<synchronous>, transform_indices = @transform_1, window_bounds = array<i64: 1152, 128>}, {transform_indices = @transform_2, window_bounds = array<i64: 1, 4, 16, 128>}, {transform_indices = @transform_3, window_bounds = array<i64: 1, 1, 2, 128>}]} {
    %c4_i32 = arith.constant 4 : i32
    %0 = arith.muli %arg1, %c4_i32 : i32
    %c0_i32 = arith.constant 0 : i32
    %1 = arith.addi %0, %c0_i32 : i32
    %c0 = arith.constant 0 : index
    %2 = arith.index_cast %1 : i32 to index
    %c0_0 = arith.constant 0 : index
    %c0_1 = arith.constant 0 : index
    %3 = vector.load %arg2[%c0, %2, %c0_0, %c0_1] : memref<1x18x18x128xf32, #tpu.memory_space<vmem>>, vector<1x4x18x128xf32>
    %4 = vector.shape_cast %3 : vector<1x4x18x128xf32> to vector<4x18x128xf32>
    %5 = vector.extract_strided_slice %4 {offsets = [0, 0, 0], sizes = [4, 16, 128], strides = [1, 1, 1]} : vector<4x18x128xf32> to vector<4x16x128xf32>
    %6 = vector.extract_strided_slice %4 {offsets = [0, 1, 0], sizes = [4, 16, 128], strides = [1, 1, 1]} : vector<4x18x128xf32> to vector<4x16x128xf32>
    %7 = vector.extract_strided_slice %4 {offsets = [0, 2, 0], sizes = [4, 16, 128], strides = [1, 1, 1]} : vector<4x18x128xf32> to vector<4x16x128xf32>
    %8 = tpu.concatenate %5, %6, %7 in 2 : vector<4x16x128xf32>, vector<4x16x128xf32>, vector<4x16x128xf32> -> vector<4x16x384xf32>
    %9 = vector.shape_cast %8 : vector<4x16x384xf32> to vector<64x384xf32>
    %c0_2 = arith.constant 0 : index
    %c0_3 = arith.constant 0 : index
    %10 = vector.load %arg3[%c0_2, %c0_3] : memref<1152x128xf32, #tpu.memory_space<vmem>>, vector<384x128xf32>
    %cst = arith.constant dense<0.000000e+00> : vector<64x128xf32>
    %11 = tpu.matmul %9, %10, %cst {dimension_numbers = #tpu.dot_dimension_numbers<[1], [0], [0], [1], [0, 0, 1, 1], [], []>} : vector<64x384xf32>, vector<384x128xf32>, vector<64x128xf32> -> vector<64x128xf32>
    %c1_i32 = arith.constant 1 : i32
    %12 = arith.addi %0, %c1_i32 : i32
    %c0_4 = arith.constant 0 : index
    %13 = arith.index_cast %12 : i32 to index
    %c0_5 = arith.constant 0 : index
    %c0_6 = arith.constant 0 : index
    %14 = vector.load %arg2[%c0_4, %13, %c0_5, %c0_6] : memref<1x18x18x128xf32, #tpu.memory_space<vmem>>, vector<1x4x18x128xf32>
    %15 = vector.shape_cast %14 : vector<1x4x18x128xf32> to vector<4x18x128xf32>
    %16 = vector.extract_strided_slice %15 {offsets = [0, 0, 0], sizes = [4, 16, 128], strides = [1, 1, 1]} : vector<4x18x128xf32> to vector<4x16x128xf32>
    %17 = vector.extract_strided_slice %15 {offsets = [0, 1, 0], sizes = [4, 16, 128], strides = [1, 1, 1]} : vector<4x18x128xf32> to vector<4x16x128xf32>
    %18 = vector.extract_strided_slice %15 {offsets = [0, 2, 0], sizes = [4, 16, 128], strides = [1, 1, 1]} : vector<4x18x128xf32> to vector<4x16x128xf32>
    %19 = tpu.concatenate %16, %17, %18 in 2 : vector<4x16x128xf32>, vector<4x16x128xf32>, vector<4x16x128xf32> -> vector<4x16x384xf32>
    %20 = vector.shape_cast %19 : vector<4x16x384xf32> to vector<64x384xf32>
    %c384 = arith.constant 384 : index
    %c0_7 = arith.constant 0 : index
    %21 = vector.load %arg3[%c384, %c0_7] : memref<1152x128xf32, #tpu.memory_space<vmem>>, vector<384x128xf32>
    %cst_8 = arith.constant dense<0.000000e+00> : vector<64x128xf32>
    %22 = tpu.matmul %20, %21, %cst_8 {dimension_numbers = #tpu.dot_dimension_numbers<[1], [0], [0], [1], [0, 0, 1, 1], [], []>} : vector<64x384xf32>, vector<384x128xf32>, vector<64x128xf32> -> vector<64x128xf32>
    %23 = arith.addf %11, %22 : vector<64x128xf32>
    %c2_i32 = arith.constant 2 : i32
    %24 = arith.addi %0, %c2_i32 : i32
    %c0_9 = arith.constant 0 : index
    %25 = arith.index_cast %24 : i32 to index
    %c0_10 = arith.constant 0 : index
    %c0_11 = arith.constant 0 : index
    %26 = vector.load %arg2[%c0_9, %25, %c0_10, %c0_11] : memref<1x18x18x128xf32, #tpu.memory_space<vmem>>, vector<1x4x18x128xf32>
    %27 = vector.shape_cast %26 : vector<1x4x18x128xf32> to vector<4x18x128xf32>
    %28 = vector.extract_strided_slice %27 {offsets = [0, 0, 0], sizes = [4, 16, 128], strides = [1, 1, 1]} : vector<4x18x128xf32> to vector<4x16x128xf32>
    %29 = vector.extract_strided_slice %27 {offsets = [0, 1, 0], sizes = [4, 16, 128], strides = [1, 1, 1]} : vector<4x18x128xf32> to vector<4x16x128xf32>
    %30 = vector.extract_strided_slice %27 {offsets = [0, 2, 0], sizes = [4, 16, 128], strides = [1, 1, 1]} : vector<4x18x128xf32> to vector<4x16x128xf32>
    %31 = tpu.concatenate %28, %29, %30 in 2 : vector<4x16x128xf32>, vector<4x16x128xf32>, vector<4x16x128xf32> -> vector<4x16x384xf32>
    %32 = vector.shape_cast %31 : vector<4x16x384xf32> to vector<64x384xf32>
    %c768 = arith.constant 768 : index
    %c0_12 = arith.constant 0 : index
    %33 = vector.load %arg3[%c768, %c0_12] : memref<1152x128xf32, #tpu.memory_space<vmem>>, vector<384x128xf32>
    %cst_13 = arith.constant dense<0.000000e+00> : vector<64x128xf32>
    %34 = tpu.matmul %32, %33, %cst_13 {dimension_numbers = #tpu.dot_dimension_numbers<[1], [0], [0], [1], [0, 0, 1, 1], [], []>} : vector<64x384xf32>, vector<384x128xf32>, vector<64x128xf32> -> vector<64x128xf32>
    %35 = arith.addf %23, %34 : vector<64x128xf32>
    %36 = vector.shape_cast %35 : vector<64x128xf32> to vector<4x16x128xf32>
    %c0_14 = arith.constant 0 : index
    %c0_15 = arith.constant 0 : index
    %c0_16 = arith.constant 0 : index
    %c0_17 = arith.constant 0 : index
    %37 = vector.load %arg4[%c0_14, %c0_15, %c0_16, %c0_17] : memref<1x4x16x128xf32, #tpu.memory_space<vmem>>, vector<1x4x16x128xf32>
    %38 = vector.shape_cast %37 : vector<1x4x16x128xf32> to vector<4x16x128xf32>
    %39 = vector.shape_cast %36 : vector<4x16x128xf32> to vector<1x4x16x128xf32>
    tpu.vector_store %arg4[%c0_14, %c0_15, %c0_16, %c0_17], %39 {strides = array<i32>} : memref<1x4x16x128xf32, #tpu.memory_space<vmem>>, vector<1x4x16x128xf32>,
    %cst_18 = arith.constant dense<0.000000e+00> : vector<128xf32>
    %40 = vector.multi_reduction <add>, %35, %cst_18 [0] : vector<64x128xf32> to vector<128xf32>
    %41 = vector.shape_cast %40 : vector<128xf32> to vector<1x128xf32>
    %42 = arith.mulf %35, %35 : vector<64x128xf32>
    %cst_19 = arith.constant dense<0.000000e+00> : vector<128xf32>
    %43 = vector.multi_reduction <add>, %42, %cst_19 [0] : vector<64x128xf32> to vector<128xf32>
    %44 = vector.shape_cast %43 : vector<128xf32> to vector<1x128xf32>
    %45 = tpu.concatenate %41, %44 in 0 : vector<1x128xf32>, vector<1x128xf32> -> vector<2x128xf32>
    %c0_20 = arith.constant 0 : index
    %c0_21 = arith.constant 0 : index
    %c0_22 = arith.constant 0 : index
    %c0_23 = arith.constant 0 : index
    %46 = vector.load %arg5[%c0_20, %c0_21, %c0_22, %c0_23] : memref<1x1x2x128xf32, #tpu.memory_space<vmem>>, vector<1x1x2x128xf32>
    %47 = vector.shape_cast %46 : vector<1x1x2x128xf32> to vector<2x128xf32>
    %48 = vector.shape_cast %45 : vector<2x128xf32> to vector<1x1x2x128xf32>
    tpu.vector_store %arg5[%c0_20, %c0_21, %c0_22, %c0_23], %48 {strides = array<i32>} : memref<1x1x2x128xf32, #tpu.memory_space<vmem>>, vector<1x1x2x128xf32>,
    return
  }
  func.func @transform_0(%arg0: i32, %arg1: i32) -> (i32, i32, i32, i32) {
    %c0_i32 = arith.constant 0 : i32
    %c0_i32_0 = arith.constant 0 : i32
    %c0_i32_1 = arith.constant 0 : i32
    %c0_i32_2 = arith.constant 0 : i32
    return %arg0, %c0_i32, %c0_i32_0, %c0_i32_1 : i32, i32, i32, i32
  }
  func.func @transform_1(%arg0: i32, %arg1: i32) -> (i32, i32) {
    %c0_i32 = arith.constant 0 : i32
    %c0_i32_0 = arith.constant 0 : i32
    %c0_i32_1 = arith.constant 0 : i32
    return %c0_i32, %c0_i32_0 : i32, i32
  }
  func.func @transform_2(%arg0: i32, %arg1: i32) -> (i32, i32, i32, i32) {
    %c0_i32 = arith.constant 0 : i32
    %c0_i32_0 = arith.constant 0 : i32
    %c0_i32_1 = arith.constant 0 : i32
    return %arg0, %arg1, %c0_i32, %c0_i32_0 : i32, i32, i32, i32
  }
  func.func @transform_3(%arg0: i32, %arg1: i32) -> (i32, i32, i32, i32) {
    %c0_i32 = arith.constant 0 : i32
    %c0_i32_0 = arith.constant 0 : i32
    %c0_i32_1 = arith.constant 0 : i32
    return %arg0, %arg1, %c0_i32, %c0_i32_0 : i32, i32, i32, i32
  }
}

module attributes {stable_mosaic.version = 11 : i64} {
  func.func @_bn_add_relu_kernel(%arg0: i32, %arg1: memref<512x128xf32, #tpu.memory_space<vmem>>, %arg2: memref<512x128xf32, #tpu.memory_space<vmem>>, %arg3: memref<1x128xf32, #tpu.memory_space<vmem>>, %arg4: memref<1x128xf32, #tpu.memory_space<vmem>>, %arg5: memref<512x128xf32, #tpu.memory_space<vmem>>) attributes {dimension_semantics = [#tpu.dimension_semantics<parallel>], iteration_bounds = array<i64: 1>, scalar_prefetch = 0 : i64, scratch_operands = 0 : i64, tpu.core_type = #tpu.core_type<tc>, window_params = [{transform_indices = @transform_0, window_bounds = array<i64: 512, 128>}, {transform_indices = @transform_1, window_bounds = array<i64: 512, 128>}, {pipeline_mode = #tpu.pipeline_mode<synchronous>, transform_indices = @transform_2, window_bounds = array<i64: 1, 128>}, {pipeline_mode = #tpu.pipeline_mode<synchronous>, transform_indices = @transform_3, window_bounds = array<i64: 1, 128>}, {transform_indices = @transform_4, window_bounds = array<i64: 512, 128>}]} {
    %c0 = arith.constant 0 : index
    %c0_0 = arith.constant 0 : index
    %0 = vector.load %arg1[%c0, %c0_0] : memref<512x128xf32, #tpu.memory_space<vmem>>, vector<512x128xf32>
    %c0_1 = arith.constant 0 : index
    %c0_2 = arith.constant 0 : index
    %1 = vector.load %arg3[%c0_1, %c0_2] : memref<1x128xf32, #tpu.memory_space<vmem>>, vector<1x128xf32>
    %2 = vector.broadcast %1 : vector<1x128xf32> to vector<512x128xf32>
    %3 = arith.mulf %0, %2 : vector<512x128xf32>
    %c0_3 = arith.constant 0 : index
    %c0_4 = arith.constant 0 : index
    %4 = vector.load %arg4[%c0_3, %c0_4] : memref<1x128xf32, #tpu.memory_space<vmem>>, vector<1x128xf32>
    %5 = vector.broadcast %4 : vector<1x128xf32> to vector<512x128xf32>
    %6 = arith.addf %3, %5 : vector<512x128xf32>
    %c0_5 = arith.constant 0 : index
    %c0_6 = arith.constant 0 : index
    %7 = vector.load %arg2[%c0_5, %c0_6] : memref<512x128xf32, #tpu.memory_space<vmem>>, vector<512x128xf32>
    %8 = arith.addf %6, %7 : vector<512x128xf32>
    %cst = arith.constant 0.000000e+00 : f32
    %9 = vector.broadcast %cst : f32 to vector<512x128xf32>
    %10 = arith.maximumf %8, %9 : vector<512x128xf32>
    %c0_7 = arith.constant 0 : index
    %c0_8 = arith.constant 0 : index
    %11 = vector.load %arg5[%c0_7, %c0_8] : memref<512x128xf32, #tpu.memory_space<vmem>>, vector<512x128xf32>
    tpu.vector_store %arg5[%c0_7, %c0_8], %10 {strides = array<i32>} : memref<512x128xf32, #tpu.memory_space<vmem>>, vector<512x128xf32>,
    return
  }
  func.func @transform_0(%arg0: i32) -> (i32, i32) {
    %c0_i32 = arith.constant 0 : i32
    %c0_i32_0 = arith.constant 0 : i32
    return %arg0, %c0_i32 : i32, i32
  }
  func.func @transform_1(%arg0: i32) -> (i32, i32) {
    %c0_i32 = arith.constant 0 : i32
    %c0_i32_0 = arith.constant 0 : i32
    return %arg0, %c0_i32 : i32, i32
  }
  func.func @transform_2(%arg0: i32) -> (i32, i32) {
    %c0_i32 = arith.constant 0 : i32
    %c0_i32_0 = arith.constant 0 : i32
    %c0_i32_1 = arith.constant 0 : i32
    return %c0_i32, %c0_i32_0 : i32, i32
  }
  func.func @transform_3(%arg0: i32) -> (i32, i32) {
    %c0_i32 = arith.constant 0 : i32
    %c0_i32_0 = arith.constant 0 : i32
    %c0_i32_1 = arith.constant 0 : i32
    return %c0_i32, %c0_i32_0 : i32, i32
  }
  func.func @transform_4(%arg0: i32) -> (i32, i32) {
    %c0_i32 = arith.constant 0 : i32
    %c0_i32_0 = arith.constant 0 : i32
    return %arg0, %c0_i32 : i32, i32
  }
}

module attributes {stable_mosaic.version = 11 : i64} {
  func.func @_bn_relu_pad_kernel(%arg0: i32, %arg1: memref<1x16x16x128xf32, #tpu.memory_space<vmem>>, %arg2: memref<1x128xf32, #tpu.memory_space<vmem>>, %arg3: memref<1x128xf32, #tpu.memory_space<vmem>>, %arg4: memref<1x18x18x128xf32, #tpu.memory_space<vmem>>) attributes {dimension_semantics = [#tpu.dimension_semantics<parallel>], iteration_bounds = array<i64: 2>, scalar_prefetch = 0 : i64, scratch_operands = 0 : i64, tpu.core_type = #tpu.core_type<tc>, window_params = [{transform_indices = @transform_0, window_bounds = array<i64: 1, 16, 16, 128>}, {pipeline_mode = #tpu.pipeline_mode<synchronous>, transform_indices = @transform_1, window_bounds = array<i64: 1, 128>}, {pipeline_mode = #tpu.pipeline_mode<synchronous>, transform_indices = @transform_2, window_bounds = array<i64: 1, 128>}, {transform_indices = @transform_3, window_bounds = array<i64: 1, 18, 18, 128>}]} {
    %c0 = arith.constant 0 : index
    %c0_0 = arith.constant 0 : index
    %0 = vector.load %arg2[%c0, %c0_0] : memref<1x128xf32, #tpu.memory_space<vmem>>, vector<1x128xf32>
    %1 = vector.shape_cast %0 : vector<1x128xf32> to vector<1x1x128xf32>
    %c0_1 = arith.constant 0 : index
    %c0_2 = arith.constant 0 : index
    %2 = vector.load %arg3[%c0_1, %c0_2] : memref<1x128xf32, #tpu.memory_space<vmem>>, vector<1x128xf32>
    %3 = vector.shape_cast %2 : vector<1x128xf32> to vector<1x1x128xf32>
    %c0_3 = arith.constant 0 : index
    %c0_4 = arith.constant 0 : index
    %c0_5 = arith.constant 0 : index
    %c0_6 = arith.constant 0 : index
    %4 = vector.load %arg1[%c0_3, %c0_4, %c0_5, %c0_6] : memref<1x16x16x128xf32, #tpu.memory_space<vmem>>, vector<1x16x16x128xf32>
    %5 = vector.shape_cast %4 : vector<1x16x16x128xf32> to vector<16x16x128xf32>
    %6 = vector.broadcast %1 : vector<1x1x128xf32> to vector<16x16x128xf32>
    %7 = arith.mulf %5, %6 : vector<16x16x128xf32>
    %8 = vector.broadcast %3 : vector<1x1x128xf32> to vector<16x16x128xf32>
    %9 = arith.addf %7, %8 : vector<16x16x128xf32>
    %cst = arith.constant 0.000000e+00 : f32
    %10 = vector.broadcast %cst : f32 to vector<16x16x128xf32>
    %11 = arith.maximumf %9, %10 : vector<16x16x128xf32>
    %cst_7 = arith.constant 0.000000e+00 : f32
    %12 = vector.broadcast %cst_7 : f32 to vector<1x18x18x128xf32>
    %c0_8 = arith.constant 0 : index
    %c0_9 = arith.constant 0 : index
    %c0_10 = arith.constant 0 : index
    %c0_11 = arith.constant 0 : index
    %13 = vector.load %arg4[%c0_8, %c0_9, %c0_10, %c0_11] : memref<1x18x18x128xf32, #tpu.memory_space<vmem>>, vector<1x18x18x128xf32>
    tpu.vector_store %arg4[%c0_8, %c0_9, %c0_10, %c0_11], %12 {strides = array<i32>} : memref<1x18x18x128xf32, #tpu.memory_space<vmem>>, vector<1x18x18x128xf32>,
    %c0_12 = arith.constant 0 : index
    %c1 = arith.constant 1 : index
    %c1_13 = arith.constant 1 : index
    %c0_14 = arith.constant 0 : index
    %14 = vector.load %arg4[%c0_12, %c1, %c1_13, %c0_14] : memref<1x18x18x128xf32, #tpu.memory_space<vmem>>, vector<1x16x16x128xf32>
    %15 = vector.shape_cast %14 : vector<1x16x16x128xf32> to vector<16x16x128xf32>
    %16 = vector.shape_cast %11 : vector<16x16x128xf32> to vector<1x16x16x128xf32>
    tpu.vector_store %arg4[%c0_12, %c1, %c1_13, %c0_14], %16 {strides = array<i32>} : memref<1x18x18x128xf32, #tpu.memory_space<vmem>>, vector<1x16x16x128xf32>,
    return
  }
  func.func @transform_0(%arg0: i32) -> (i32, i32, i32, i32) {
    %c0_i32 = arith.constant 0 : i32
    %c0_i32_0 = arith.constant 0 : i32
    %c0_i32_1 = arith.constant 0 : i32
    %c0_i32_2 = arith.constant 0 : i32
    return %arg0, %c0_i32, %c0_i32_0, %c0_i32_1 : i32, i32, i32, i32
  }
  func.func @transform_1(%arg0: i32) -> (i32, i32) {
    %c0_i32 = arith.constant 0 : i32
    %c0_i32_0 = arith.constant 0 : i32
    %c0_i32_1 = arith.constant 0 : i32
    return %c0_i32, %c0_i32_0 : i32, i32
  }
  func.func @transform_2(%arg0: i32) -> (i32, i32) {
    %c0_i32 = arith.constant 0 : i32
    %c0_i32_0 = arith.constant 0 : i32
    %c0_i32_1 = arith.constant 0 : i32
    return %c0_i32, %c0_i32_0 : i32, i32
  }
  func.func @transform_3(%arg0: i32) -> (i32, i32, i32, i32) {
    %c0_i32 = arith.constant 0 : i32
    %c0_i32_0 = arith.constant 0 : i32
    %c0_i32_1 = arith.constant 0 : i32
    %c0_i32_2 = arith.constant 0 : i32
    return %arg0, %c0_i32, %c0_i32_0, %c0_i32_1 : i32, i32, i32, i32
  }
}

</mosaic_0001>

<bundles_post_ra>
// kernel: basic_block_forward.5
= control target key start
LH: loop header
LB: loop body
LE: loop exit
PB: predicated region body
PF: predicated region fallthrough
CT: control target
= control target key end

     0   :  { %s539_s12 = smov 0   ;;  %s752_s0 = inlined_call_operand.vmem [shape: f32[2,16,16,128], index: 0, kind: input, shape index: {}]   ;;  %s753_s1 = inlined_call_operand.vmem [shape: f32[1,128], index: 1, kind: input, shape index: {}]   ;;  %s754_s2 = inlined_call_operand.vmem [shape: f32[1,128], index: 2, kind: input, shape index: {}]   ;;  %s755_s3 = inlined_call_operand.vmem [shape: f32[2,18,18,128], index: 3, kind: output, shape index: {}]  }
   0x1 LB: > { %s455_s13 = sadd.s32 4294967295, %s516_s12   ;;  %p459_p0 = scmp.ge.s32.totalorder %s516_s12, 1  ;;  %s516_s12 = sphi %s539_s12, %s13_s12  }
   0x2   : > { %p137_p1 = scmp.lt.s32.totalorder %s516_s12, 3 }
   0x4   : > { %p138_p2 = pnand %p459_p0, %p137_p1 }
   0x5   : > { %p161_p3 = scmp.lt.s32.totalorder (!%p138_p2), %s455_s13, 1 }
   0x6   : > { %141 = sbr.rel (%p138_p2) target bundleno = 58 (0x3a), region = 32 }
   0xb   : > { %s757_s13 = smov (!%p161_p3, %s455_s13), 1  ;;  %v550_v0 = vld [vmem:[%s753_s1] ss:$0 sm:$0xff]  ;;  %v518_v5 = vmov 0.0  }
   0xc   : > { %s500_s14 = smul.u32 432, %s757_s13  ;;  %s499_s15 = sshll.u32 %s757_s13, 8  ;;  %v560_v1 = vld [vmem:[%s754_s2] ss:$0 sm:$0xff] }
   0xd   : > { %s555_s20 = scalar_lea.vmem %s752_s0, %s499_s15 }
   0xe   : > { %s565_s25 = scalar_lea.vmem %s755_s3, %s500_s14  ;;  %v173_v2 = vld [vmem:[%s555_s20] sm:$0xff]  ;;  %v174_v3 = vld [vmem:[%s555_s20 + $0x8] sm:$0xff]  ;;  %v175_v4 = vld [vmem:[%s555_s20 + $0x10] sm:$0xff] }
   0xf   : > { %316 = vst [vmem:[%s565_s25 + $0x18] sm:$0xff] %v518_v5  ;;  %313 = vst [vmem:[%s565_s25] sm:$0xff] %v518_v5  ;;  %v211_v6 = vmul.f32 %v550_v0, %v173_v2  ;;  %v212_v7 = vmul.f32 %v550_v0, %v174_v3  ;;  %v213_v8 = vmul.f32 %v550_v0, %v175_v4  ;;  %v176_v9 = vld [vmem:[%s555_s20 + $0x18] sm:$0xff]  ;;  %v177_v10 = vld [vmem:[%s555_s20 + $0x20] sm:$0xff] }
  0x10   : > { %314 = vst [vmem:[%s565_s25 + $0x8] sm:$0xff] %v518_v5  ;;  %315 = vst [vmem:[%s565_s25 + $0x10] sm:$0x3] %v518_v5  ;;  %v178_v11 = vld [vmem:[%s555_s20 + $0x28] sm:$0xff]  ;;  %v214_v12 = vmul.f32 %v550_v0, %v176_v9  ;;  %v215_v13 = vmul.f32 %v550_v0, %v177_v10  ;;  %v179_v15 = vld [vmem:[%s555_s20 + $0x30] sm:$0xff] }
  0x11   : > { %317 = vst [vmem:[%s565_s25 + $0x20] sm:$0xff] %v518_v5  ;;  %318 = vst [vmem:[%s565_s25 + $0x28] sm:$0x3] %v518_v5  ;;  %v216_v14 = vmul.f32 %v550_v0, %v178_v11  ;;  %v180_v16 = vld [vmem:[%s555_s20 + $0x38] sm:$0xff]  ;;  %v249_v17 = vadd.f32 %v560_v1, %v211_v6  ;;  %v250_v18 = vadd.f32 %v560_v1, %v212_v7  ;;  %v181_v25 = vld [vmem:[%s555_s20 + $0x40] sm:$0xff] }
  0x12   : > { %319 = vst [vmem:[%s565_s25 + $0x30] sm:$0xff] %v518_v5  ;;  %320 = vst [vmem:[%s565_s25 + $0x38] sm:$0xff] %v518_v5  ;;  %v251_v19 = vadd.f32 %v560_v1, %v213_v8  ;;  %v217_v20 = vmul.f32 %v550_v0, %v179_v15  ;;  %v252_v21 = vadd.f32 %v560_v1, %v214_v12  ;;  %v182_v26 = vld [vmem:[%s555_s20 + $0x48] sm:$0xff]  ;;  %v183_v27 = vld [vmem:[%s555_s20 + $0x50] sm:$0xff] }
  0x13   : > { %321 = vst [vmem:[%s565_s25 + $0x40] sm:$0x3] %v518_v5  ;;  %322 = vst [vmem:[%s565_s25 + $0x48] sm:$0xff] %v518_v5  ;;  %v253_v22 = vadd.f32 %v560_v1, %v215_v13  ;;  %v254_v23 = vadd.f32 %v560_v1, %v216_v14  ;;  %v218_v24 = vmul.f32 %v550_v0, %v180_v16  ;;  %v281_v28 = vmax.f32 %v249_v17, 0.0  ;;  %v184_v32 = vld [vmem:[%s555_s20 + $0x58] sm:$0xff]  ;;  %v185_v33 = vld [vmem:[%s555_s20 + $0x60] sm:$0xff] }
  0x14   : > { %323 = vst [vmem:[%s565_s25 + $0x50] sm:$0xff] %v518_v5  ;;  %324 = vst [vmem:[%s565_s25 + $0x58] sm:$0x3] %v518_v5  ;;  %v282_v29 = vmax.f32 %v250_v18, 0.0  ;;  %v283_v30 = vmax.f32 %v251_v19, 0.0  ;;  %v255_v31 = vadd.f32 %v560_v1, %v217_v20  ;;  %v186_v34 = vld [vmem:[%s555_s20 + $0x68] sm:$0xff]  ;;  %v219_v41 = vmul.f32 %v550_v0, %v181_v25 }
  0x15   : > { %325 = vst [vmem:[%s565_s25 + $0x60] sm:$0xff] %v518_v5  ;;  %326 = vst [vmem:[%s565_s25 + $0x68] sm:$0xff] %v518_v5  ;;  %v284_v35 = vmax.f32 %v252_v21, 0.0  ;;  %v285_v36 = vmax.f32 %v253_v22, 0.0  ;;  %v286_v37 = vmax.f32 %v254_v23, 0.0  ;;  %v256_v38 = vadd.f32 %v560_v1, %v218_v24  ;;  %v187_v39 = vld [vmem:[%s555_s20 + $0x70] sm:$0xff] }
  0x16   : > { %327 = vst [vmem:[%s565_s25 + $0x70] sm:$0x3] %v518_v5  ;;  %328 = vst [vmem:[%s565_s25 + $0x78] sm:$0xff] %v518_v5  ;;  %v287_v40 = vmax.f32 %v255_v31, 0.0  ;;  %v220_v42 = vmul.f32 %v550_v0, %v182_v26  ;;  %v221_v43 = vmul.f32 %v550_v0, %v183_v27  ;;  %v188_v44 = vld [vmem:[%s555_s20 + $0x78] sm:$0xff]  ;;  %v222_v46 = vmul.f32 %v550_v0, %v184_v32  ;;  %v189_v57 = vld [vmem:[%s555_s20 + $0x80] sm:$0xff] }
  0x17   : > { %329 = vst [vmem:[%s565_s25 + $0x80] sm:$0xff] %v518_v5  ;;  %330 = vst [vmem:[%s565_s25 + $0x88] sm:$0x3] %v518_v5  ;;  %v288_v45 = vmax.f32 %v256_v38, 0.0  ;;  %v223_v47 = vmul.f32 %v550_v0, %v185_v33  ;;  %v224_v48 = vmul.f32 %v550_v0, %v186_v34  ;;  %v257_v49 = vadd.f32 %v560_v1, %v219_v41  ;;  %v190_v58 = vld [vmem:[%s555_s20 + $0x88] sm:$0xff]  ;;  %v191_v59 = vld [vmem:[%s555_s20 + $0x90] sm:$0xff] }
  0x18   : > { %331 = vst [vmem:[%s565_s25 + $0x90] sm:$0xff] %v518_v5  ;;  %332 = vst [vmem:[%s565_s25 + $0x98] sm:$0xff] %v518_v5  ;;  %v258_v50 = vadd.f32 %v560_v1, %v220_v42  ;;  %v259_v51 = vadd.f32 %v560_v1, %v221_v43  ;;  %v225_v52 = vmul.f32 %v550_v0, %v187_v39  ;;  %v192_v2 = vld [vmem:[%s555_s20 + $0x98] sm:$0xff]  ;;  %v193_v3 = vld [vmem:[%s555_s20 + $0xa0] sm:$0xff] }
  0x19   : > { %333 = vst [vmem:[%s565_s25 + $0xa0] sm:$0x3] %v518_v5  ;;  %334 = vst [vmem:[%s565_s25 + $0xa8] sm:$0xff] %v518_v5  ;;  %v260_v53 = vadd.f32 %v560_v1, %v222_v46  ;;  %v261_v54 = vadd.f32 %v560_v1, %v223_v47  ;;  %v262_v55 = vadd.f32 %v560_v1, %v224_v48  ;;  %v289_v60 = vmax.f32 %v257_v49, 0.0  ;;  %v194_v4 = vld [vmem:[%s555_s20 + $0xa8] sm:$0xff]  ;;  %v195_v9 = vld [vmem:[%s555_s20 + $0xb0] sm:$0xff] }
  0x1a   : > { %335 = vst [vmem:[%s565_s25 + $0xb0] sm:$0xff] %v518_v5  ;;  %336 = vst [vmem:[%s565_s25 + $0xb8] sm:$0x3] %v518_v5  ;;  %v226_v56 = vmul.f32 %v550_v0, %v188_v44  ;;  %v290_v61 = vmax.f32 %v258_v50, 0.0  ;;  %v291_v62 = vmax.f32 %v259_v51, 0.0  ;;  %v263_v63 = vadd.f32 %v560_v1, %v225_v52  ;;  %v196_v14 = vld [vmem:[%s555_s20 + $0xb8] sm:$0xff] }
  0x1b   : > { %337 = vst [vmem:[%s565_s25 + $0xc0] sm:$0xff] %v518_v5  ;;  %338 = vst [vmem:[%s565_s25 + $0xc8] sm:$0xff] %v518_v5  ;;  %v293_v6 = vmax.f32 %v261_v54, 0.0  ;;  %v294_v7 = vmax.f32 %v262_v55, 0.0  ;;  %v227_v11 = vmul.f32 %v550_v0, %v189_v57  ;;  %v228_v12 = vmul.f32 %v550_v0, %v190_v58  ;;  %v197_v27 = vld [vmem:[%s555_s20 + $0xc0] sm:$0xff]  ;;  %v200_v34 = vld [vmem:[%s555_s20 + $0xd8] sm:$0xff] }
  0x1c   : > { %339 = vst [vmem:[%s565_s25 + $0xd0] sm:$0x3] %v518_v5  ;;  %340 = vst [vmem:[%s565_s25 + $0xd8] sm:$0xff] %v518_v5  ;;  %v264_v8 = vadd.f32 %v560_v1, %v226_v56  ;;  %v295_v10 = vmax.f32 %v263_v63, 0.0  ;;  %v229_v13 = vmul.f32 %v550_v0, %v191_v59  ;;  %v230_v16 = vmul.f32 %v550_v0, %v192_v2  ;;  %v203_v41 = vld [vmem:[%s555_s20 + $0xf0] sm:$0xff]  ;;  %v204_v46 = vld [vmem:[%s555_s20 + $0xf8] sm:$0xff] }
  0x1d   : > { %341 = vst [vmem:[%s565_s25 + $0xe0] sm:$0xff] %v518_v5  ;;  %342 = vst [vmem:[%s565_s25 + $0xe8] sm:$0x3] %v518_v5  ;;  %v231_v17 = vmul.f32 %v550_v0, %v193_v3  ;;  %v232_v18 = vmul.f32 %v550_v0, %v194_v4  ;;  %v265_v19 = vadd.f32 %v560_v1, %v227_v11 }
  0x1e   : > { %343 = vst [vmem:[%s565_s25 + $0xf0] sm:$0xff] %v518_v5  ;;  %344 = vst [vmem:[%s565_s25 + $0xf8] sm:$0xff] %v518_v5  ;;  %v296_v15 = vmax.f32 %v264_v8, 0.0  ;;  %v266_v20 = vadd.f32 %v560_v1, %v228_v12  ;;  %v267_v21 = vadd.f32 %v560_v1, %v229_v13  ;;  %v233_v22 = vmul.f32 %v550_v0, %v195_v9 }
  0x1f   : > { %345 = vst [vmem:[%s565_s25 + $0x100] sm:$0x3] %v518_v5  ;;  %346 = vst [vmem:[%s565_s25 + $0x108] sm:$0xff] %v518_v5  ;;  %v268_v23 = vadd.f32 %v560_v1, %v230_v16  ;;  %v269_v24 = vadd.f32 %v560_v1, %v231_v17  ;;  %v270_v25 = vadd.f32 %v560_v1, %v232_v18 }
  0x20   : > { %347 = vst [vmem:[%s565_s25 + $0x110] sm:$0xff] %v518_v5  ;;  %348 = vst [vmem:[%s565_s25 + $0x118] sm:$0x3] %v518_v5  ;;  %v234_v26 = vmul.f32 %v550_v0, %v196_v14  ;;  %v298_v31 = vmax.f32 %v266_v20, 0.0  ;;  %v299_v32 = vmax.f32 %v267_v21, 0.0  ;;  %v271_v33 = vadd.f32 %v560_v1, %v233_v22 }
  0x21   : > { %349 = vst [vmem:[%s565_s25 + $0x120] sm:$0xff] %v518_v5  ;;  %350 = vst [vmem:[%s565_s25 + $0x128] sm:$0xff] %v518_v5  ;;  %v301_v38 = vmax.f32 %v269_v24, 0.0  ;;  %v302_v39 = vmax.f32 %v270_v25, 0.0  ;;  %v235_v43 = vmul.f32 %v550_v0, %v197_v27  ;;  %v238_v48 = vmul.f32 %v550_v0, %v200_v34 }
  0x22   : > { %351 = vst [vmem:[%s565_s25 + $0x130] sm:$0x3] %v518_v5  ;;  %352 = vst [vmem:[%s565_s25 + $0x138] sm:$0xff] %v518_v5  ;;  %v303_v42 = vmax.f32 %v271_v33, 0.0  ;;  %v241_v54 = vmul.f32 %v550_v0, %v203_v41  ;;  %v242_v58 = vmul.f32 %v550_v0, %v204_v46 }
  0x23   : > { %353 = vst [vmem:[%s565_s25 + $0x140] sm:$0xff] %v518_v5  ;;  %354 = vst [vmem:[%s565_s25 + $0x148] sm:$0x3] %v518_v5  ;;  %v273_v51 = vadd.f32 %v560_v1, %v235_v43  ;;  %v276_v55 = vadd.f32 %v560_v1, %v238_v48 }
  0x24   : > { %355 = vst [vmem:[%s565_s25 + $0x150] sm:$0xff] %v518_v5  ;;  %356 = vst [vmem:[%s565_s25 + $0x158] sm:$0xff] %v518_v5  ;;  %v280_v4 = vadd.f32 %v560_v1, %v242_v58 }
  0x25   : > { %357 = vst [vmem:[%s565_s25 + $0x160] sm:$0x3] %v518_v5  ;;  %358 = vst [vmem:[%s565_s25 + $0x168] sm:$0xff] %v518_v5  ;;  %v305_v59 = vmax.f32 %v273_v51, 0.0  ;;  %v308_v63 = vmax.f32 %v276_v55, 0.0 }
  0x26   : > { %359 = vst [vmem:[%s565_s25 + $0x170] sm:$0xff] %v518_v5  ;;  %360 = vst [vmem:[%s565_s25 + $0x178] sm:$0x3] %v518_v5 }
  0x27   : > { %361 = vst [vmem:[%s565_s25 + $0x180] sm:$0xff] %v518_v5  ;;  %362 = vst [vmem:[%s565_s25 + $0x188] sm:$0xff] %v518_v5 }
  0x28   : > { %363 = vst [vmem:[%s565_s25 + $0x190] sm:$0x3] %v518_v5  ;;  %364 = vst [vmem:[%s565_s25 + $0x198] sm:$0xff] %v518_v5 }
  0x29   : > { %365 = vst [vmem:[%s565_s25 + $0x1a0] sm:$0xff] %v518_v5  ;;  %366 = vst [vmem:[%s565_s25 + $0x1a8] sm:$0x3] %v518_v5  ;;  %v292_v5 = vmax.f32 %v260_v53, 0.0 }
  0x2a   : > { %465 = vst [vmem:[%s565_s25 + $0x19] sm:$0xff] %v281_v28  ;;  %466 = vst [vmem:[%s565_s25 + $0x21] sm:$0xff] %v282_v29  ;;  %v198_v28 = vld [vmem:[%s555_s20 + $0xc8] sm:$0xff]  ;;  %v199_v29 = vld [vmem:[%s555_s20 + $0xd0] sm:$0xff] }
  0x2b   : > { %467 = vst [vmem:[%s565_s25 + $0x31] sm:$0xff] %v283_v30  ;;  %468 = vst [vmem:[%s565_s25 + $0x39] sm:$0xff] %v284_v35  ;;  %v297_v30 = vmax.f32 %v265_v19, 0.0  ;;  %v201_v35 = vld [vmem:[%s555_s20 + $0xe0] sm:$0xff]  ;;  %v236_v44 = vmul.f32 %v550_v0, %v198_v28 }
  0x2c   : > { %469 = vst [vmem:[%s565_s25 + $0x49] sm:$0xff] %v285_v36  ;;  %470 = vst [vmem:[%s565_s25 + $0x51] sm:$0xff] %v286_v37  ;;  %v202_v36 = vld [vmem:[%s555_s20 + $0xe8] sm:$0xff]  ;;  %v300_v37 = vmax.f32 %v268_v23, 0.0  ;;  %v239_v49 = vmul.f32 %v550_v0, %v201_v35 }
  0x2d   : > { %471 = vst [vmem:[%s565_s25 + $0x61] sm:$0xff] %v287_v40  ;;  %472 = vst [vmem:[%s565_s25 + $0x69] sm:$0xff] %v288_v45  ;;  %v272_v40 = vadd.f32 %v560_v1, %v234_v26  ;;  %v237_v45 = vmul.f32 %v550_v0, %v199_v29  ;;  %v240_v50 = vmul.f32 %v550_v0, %v202_v36  ;;  %v312_v0 = vmax.f32 %v280_v4, 0.0 }
  0x2e   : > { %473 = vst [vmem:[%s565_s25 + $0x79] sm:$0xff] %v289_v60  ;;  %474 = vst [vmem:[%s565_s25 + $0x81] sm:$0xff] %v290_v61  ;;  %v274_v52 = vadd.f32 %v560_v1, %v236_v44  ;;  %v277_v56 = vadd.f32 %v560_v1, %v239_v49 }
  0x2f   : > { %475 = vst [vmem:[%s565_s25 + $0x91] sm:$0xff] %v291_v62  ;;  %476 = vst [vmem:[%s565_s25 + $0x99] sm:$0xff] %v292_v5  ;;  %v304_v47 = vmax.f32 %v272_v40, 0.0  ;;  %v275_v53 = vadd.f32 %v560_v1, %v237_v45  ;;  %v278_v57 = vadd.f32 %v560_v1, %v240_v50  ;;  %v279_v62 = vadd.f32 %v560_v1, %v241_v54 }
  0x30   : > { %477 = vst [vmem:[%s565_s25 + $0xa9] sm:$0xff] %v293_v6  ;;  %478 = vst [vmem:[%s565_s25 + $0xb1] sm:$0xff] %v294_v7  ;;  %v306_v60 = vmax.f32 %v274_v52, 0.0  ;;  %v309_v2 = vmax.f32 %v277_v56, 0.0 }
  0x31   : > { %479 = vst [vmem:[%s565_s25 + $0xc1] sm:$0xff] %v295_v10  ;;  %480 = vst [vmem:[%s565_s25 + $0xc9] sm:$0xff] %v296_v15  ;;  %v307_v61 = vmax.f32 %v275_v53, 0.0  ;;  %v310_v3 = vmax.f32 %v278_v57, 0.0  ;;  %v311_v5 = vmax.f32 %v279_v62, 0.0 }
  0x32   : > { %481 = vst [vmem:[%s565_s25 + $0xd9] sm:$0xff] %v297_v30  ;;  %482 = vst [vmem:[%s565_s25 + $0xe1] sm:$0xff] %v298_v31 }
  0x33   : > { %483 = vst [vmem:[%s565_s25 + $0xf1] sm:$0xff] %v299_v32  ;;  %484 = vst [vmem:[%s565_s25 + $0xf9] sm:$0xff] %v300_v37 }
  0x34   : > { %485 = vst [vmem:[%s565_s25 + $0x109] sm:$0xff] %v301_v38  ;;  %486 = vst [vmem:[%s565_s25 + $0x111] sm:$0xff] %v302_v39 }
  0x35   : > { %487 = vst [vmem:[%s565_s25 + $0x121] sm:$0xff] %v303_v42  ;;  %488 = vst [vmem:[%s565_s25 + $0x129] sm:$0xff] %v304_v47 }
  0x36   : > { %489 = vst [vmem:[%s565_s25 + $0x139] sm:$0xff] %v305_v59  ;;  %490 = vst [vmem:[%s565_s25 + $0x141] sm:$0xff] %v306_v60 }
  0x37   : > { %491 = vst [vmem:[%s565_s25 + $0x151] sm:$0xff] %v307_v61  ;;  %492 = vst [vmem:[%s565_s25 + $0x159] sm:$0xff] %v308_v63 }
  0x38   : > { %493 = vst [vmem:[%s565_s25 + $0x169] sm:$0xff] %v309_v2  ;;  %494 = vst [vmem:[%s565_s25 + $0x171] sm:$0xff] %v310_v3 }
  0x39   : > { %495 = vst [vmem:[%s565_s25 + $0x181] sm:$0xff] %v311_v5  ;;  %496 = vst [vmem:[%s565_s25 + $0x189] sm:$0xff] %v312_v0 }
  0x3a PF: > { %s13_s12 = sadd.s32 1, %s516_s12  }
  0x3b   : > { %p10_p4 = scmp.ge.s32.totalorder %s13_s12, 4  }
  0x3d   :  { %12 = sbr.rel (!%p10_p4) target bundleno = 1 (0x1), region = 63 }

// kernel: basic_block_forward.7
= control target key start
LH: loop header
LB: loop body
LE: loop exit
PB: predicated region body
PF: predicated region fallthrough
CT: control target
= control target key end

     0   :  { %s1224_s0 = inlined_call_operand.vmem [shape: f32[512,128], index: 0, kind: input, shape index: {}]   ;;  %s1225_s1 = inlined_call_operand.vmem [shape: f32[512,128], index: 1, kind: input, shape index: {}]   ;;  %s1226_s2 = inlined_call_operand.vmem [shape: f32[1,128], index: 2, kind: input, shape index: {}]   ;;  %s1227_s3 = inlined_call_operand.vmem [shape: f32[1,128], index: 3, kind: input, shape index: {}]   ;;  %s1228_s4 = inlined_call_operand.vmem [shape: f32[512,128], index: 4, kind: output, shape index: {}]  }
   0x1   :  { %v17_v0 = vld [vmem:[%s1224_s0] sm:$0xff]  ;;  %v18_v4 = vld [vmem:[%s1224_s0 + $0x8] sm:$0xff]  ;;  %v19_v7 = vld [vmem:[%s1224_s0 + $0x10] sm:$0xff] }
   0x2   :  { %v516_v1 = vld [vmem:[%s1226_s2] ss:$0 sm:$0xff]  ;;  %v20_v8 = vld [vmem:[%s1224_s0 + $0x18] sm:$0xff]  ;;  %v224_v10 = vld [vmem:[%s1225_s1 + $0x8] sm:$0xff] }
   0x3   :  { %v521_v2 = vld [vmem:[%s1227_s3] ss:$0 sm:$0xff]  ;;  %v88_v3 = vmul.f32 %v516_v1, %v17_v0  ;;  %v89_v6 = vmul.f32 %v516_v1, %v18_v4  ;;  %v90_v11 = vmul.f32 %v516_v1, %v19_v7  ;;  %v225_v12 = vld [vmem:[%s1225_s1 + $0x10] sm:$0xff]  ;;  %v91_v13 = vmul.f32 %v516_v1, %v20_v8  ;;  %v226_v16 = vld [vmem:[%s1225_s1 + $0x18] sm:$0xff] }
   0x4   :  { %v223_v5 = vld [vmem:[%s1225_s1] sm:$0xff]  ;;  %v22_v18 = vld [vmem:[%s1224_s0 + $0x28] sm:$0xff]  ;;  %v23_v19 = vld [vmem:[%s1224_s0 + $0x30] sm:$0xff] }
   0x5   :  { %v159_v9 = vadd.f32 %v521_v2, %v88_v3  ;;  %v21_v14 = vld [vmem:[%s1224_s0 + $0x20] sm:$0xff]  ;;  %v160_v15 = vadd.f32 %v521_v2, %v89_v6  ;;  %v161_v21 = vadd.f32 %v521_v2, %v90_v11  ;;  %v162_v22 = vadd.f32 %v521_v2, %v91_v13  ;;  %v24_v25 = vld [vmem:[%s1224_s0 + $0x38] sm:$0xff]  ;;  %v228_v28 = vld [vmem:[%s1225_s1 + $0x28] sm:$0xff] }
   0x6   :  { %v92_v17 = vmul.f32 %v516_v1, %v21_v14  ;;  %v227_v23 = vld [vmem:[%s1225_s1 + $0x20] sm:$0xff]  ;;  %v93_v24 = vmul.f32 %v516_v1, %v22_v18  ;;  %v94_v29 = vmul.f32 %v516_v1, %v23_v19  ;;  %v95_v30 = vmul.f32 %v516_v1, %v24_v25  ;;  %v229_v36 = vld [vmem:[%s1225_s1 + $0x30] sm:$0xff]  ;;  %v230_v37 = vld [vmem:[%s1225_s1 + $0x38] sm:$0xff] }
   0x7   :  { %v287_v20 = vadd.f32 %v223_v5, %v159_v9  ;;  %v288_v26 = vadd.f32 %v224_v10, %v160_v15  ;;  %v25_v31 = vld [vmem:[%s1224_s0 + $0x40] sm:$0xff]  ;;  %v289_v33 = vadd.f32 %v225_v12, %v161_v21  ;;  %v290_v34 = vadd.f32 %v226_v16, %v162_v22  ;;  %v26_v38 = vld [vmem:[%s1224_s0 + $0x48] sm:$0xff]  ;;  %v27_v43 = vld [vmem:[%s1224_s0 + $0x50] sm:$0xff] }
   0x8   :  { %v163_v27 = vadd.f32 %v521_v2, %v92_v17  ;;  %v164_v35 = vadd.f32 %v521_v2, %v93_v24  ;;  %v165_v41 = vadd.f32 %v521_v2, %v94_v29  ;;  %v166_v42 = vadd.f32 %v521_v2, %v95_v30  ;;  %v28_v44 = vld [vmem:[%s1224_s0 + $0x58] sm:$0xff]  ;;  %v29_v49 = vld [vmem:[%s1224_s0 + $0x60] sm:$0xff]  ;;  %v30_v55 = vld [vmem:[%s1224_s0 + $0x68] sm:$0xff] }
   0x9   :  { %v351_v32 = vmax.f32 %v287_v20, 0.0  ;;  %v352_v39 = vmax.f32 %v288_v26, 0.0  ;;  %v353_v45 = vmax.f32 %v289_v33, 0.0  ;;  %v354_v46 = vmax.f32 %v290_v34, 0.0  ;;  %v231_v53 = vld [vmem:[%s1225_s1 + $0x40] sm:$0xff]  ;;  %v232_v58 = vld [vmem:[%s1225_s1 + $0x48] sm:$0xff] }
   0xa   :  { %v291_v40 = vadd.f32 %v227_v23, %v163_v27  ;;  %v292_v47 = vadd.f32 %v228_v28, %v164_v35  ;;  %v96_v48 = vmul.f32 %v516_v1, %v25_v31  ;;  %v293_v51 = vadd.f32 %v229_v36, %v165_v41  ;;  %v31_v61 = vld [vmem:[%s1224_s0 + $0x70] sm:$0xff]  ;;  %v32_v62 = vld [vmem:[%s1224_s0 + $0x78] sm:$0xff]  ;;  %v235_v10 = vld [vmem:[%s1225_s1 + $0x60] sm:$0xff] }
   0xb   :  { %415 = vst [vmem:[%s1228_s4] sm:$0xff] %v351_v32  ;;  %416 = vst [vmem:[%s1228_s4 + $0x8] sm:$0xff] %v352_v39  ;;  %v294_v52 = vadd.f32 %v230_v37, %v166_v42  ;;  %v97_v54 = vmul.f32 %v516_v1, %v26_v38  ;;  %v98_v59 = vmul.f32 %v516_v1, %v27_v43  ;;  %v233_v4 = vld [vmem:[%s1225_s1 + $0x50] sm:$0xff]  ;;  %v234_v5 = vld [vmem:[%s1225_s1 + $0x58] sm:$0xff] }
   0xc   :  { %v355_v50 = vmax.f32 %v291_v40, 0.0  ;;  %417 = vst [vmem:[%s1228_s4 + $0x10] sm:$0xff] %v353_v45  ;;  %418 = vst [vmem:[%s1228_s4 + $0x18] sm:$0xff] %v354_v46  ;;  %v356_v56 = vmax.f32 %v292_v47, 0.0  ;;  %v167_v57 = vadd.f32 %v521_v2, %v96_v48  ;;  %v99_v60 = vmul.f32 %v516_v1, %v28_v44  ;;  %v236_v14 = vld [vmem:[%s1225_s1 + $0x68] sm:$0xff]  ;;  %v33_v17 = vld [vmem:[%s1224_s0 + $0x80] sm:$0xff] }
   0xd   :  { %v357_v63 = vmax.f32 %v293_v51, 0.0  ;;  %v358_v0 = vmax.f32 %v294_v52, 0.0  ;;  %v168_v3 = vadd.f32 %v521_v2, %v97_v54  ;;  %v100_v6 = vmul.f32 %v516_v1, %v29_v49  ;;  %v237_v22 = vld [vmem:[%s1225_s1 + $0x70] sm:$0xff]  ;;  %v238_v23 = vld [vmem:[%s1225_s1 + $0x78] sm:$0xff]  ;;  %v34_v24 = vld [vmem:[%s1224_s0 + $0x88] sm:$0xff] }
   0xe   :  { %419 = vst [vmem:[%s1228_s4 + $0x20] sm:$0xff] %v355_v50  ;;  %420 = vst [vmem:[%s1228_s4 + $0x28] sm:$0xff] %v356_v56  ;;  %v295_v7 = vadd.f32 %v231_v53, %v167_v57  ;;  %v169_v8 = vadd.f32 %v521_v2, %v98_v59  ;;  %v170_v9 = vadd.f32 %v521_v2, %v99_v60  ;;  %v35_v29 = vld [vmem:[%s1224_s0 + $0x90] sm:$0xff]  ;;  %v36_v30 = vld [vmem:[%s1224_s0 + $0x98] sm:$0xff] }
   0xf   :  { %v101_v11 = vmul.f32 %v516_v1, %v30_v55  ;;  %421 = vst [vmem:[%s1228_s4 + $0x30] sm:$0xff] %v357_v63  ;;  %422 = vst [vmem:[%s1228_s4 + $0x38] sm:$0xff] %v358_v0  ;;  %v296_v12 = vadd.f32 %v232_v58, %v168_v3  ;;  %v171_v13 = vadd.f32 %v521_v2, %v100_v6  ;;  %v37_v35 = vld [vmem:[%s1224_s0 + $0xa0] sm:$0xff]  ;;  %v38_v41 = vld [vmem:[%s1224_s0 + $0xa8] sm:$0xff] }
  0x10   :  { %v102_v15 = vmul.f32 %v516_v1, %v31_v61  ;;  %v103_v16 = vmul.f32 %v516_v1, %v32_v62  ;;  %v359_v18 = vmax.f32 %v295_v7, 0.0  ;;  %v297_v19 = vadd.f32 %v233_v4, %v169_v8  ;;  %v239_v39 = vld [vmem:[%s1225_s1 + $0x80] sm:$0xff]  ;;  %v240_v44 = vld [vmem:[%s1225_s1 + $0x88] sm:$0xff]  ;;  %v39_v47 = vld [vmem:[%s1224_s0 + $0xb0] sm:$0xff] }
  0x11   :  { %v298_v20 = vadd.f32 %v234_v5, %v170_v9  ;;  %v172_v21 = vadd.f32 %v521_v2, %v101_v11  ;;  %v360_v25 = vmax.f32 %v296_v12, 0.0  ;;  %v299_v26 = vadd.f32 %v235_v10, %v171_v13  ;;  %v40_v48 = vld [vmem:[%s1224_s0 + $0xb8] sm:$0xff]  ;;  %v241_v52 = vld [vmem:[%s1225_s1 + $0x90] sm:$0xff]  ;;  %v243_v58 = vld [vmem:[%s1225_s1 + $0xa0] sm:$0xff] }
  0x12   :  { %v173_v27 = vadd.f32 %v521_v2, %v102_v15  ;;  %v174_v28 = vadd.f32 %v521_v2, %v103_v16  ;;  %423 = vst [vmem:[%s1228_s4 + $0x40] sm:$0xff] %v359_v18  ;;  %v361_v31 = vmax.f32 %v297_v19, 0.0  ;;  %v104_v34 = vmul.f32 %v516_v1, %v33_v17  ;;  %v242_v53 = vld [vmem:[%s1225_s1 + $0x98] sm:$0xff]  ;;  %v244_v62 = vld [vmem:[%s1225_s1 + $0xa8] sm:$0xff]  ;;  %v41_v3 = vld [vmem:[%s1224_s0 + $0xc0] sm:$0xff] }
  0x13   :  { %v362_v32 = vmax.f32 %v298_v20, 0.0  ;;  %v300_v33 = vadd.f32 %v236_v14, %v172_v21  ;;  %424 = vst [vmem:[%s1228_s4 + $0x48] sm:$0xff] %v360_v25  ;;  %v363_v36 = vmax.f32 %v299_v26, 0.0  ;;  %v105_v40 = vmul.f32 %v516_v1, %v34_v24  ;;  %v245_v8 = vld [vmem:[%s1225_s1 + $0xb0] sm:$0xff]  ;;  %v246_v9 = vld [vmem:[%s1225_s1 + $0xb8] sm:$0xff]  ;;  %v42_v10 = vld [vmem:[%s1224_s0 + $0xc8] sm:$0xff] }
  0x14   :  { %v301_v37 = vadd.f32 %v237_v22, %v173_v27  ;;  %v302_v38 = vadd.f32 %v238_v23, %v174_v28  ;;  %425 = vst [vmem:[%s1228_s4 + $0x50] sm:$0xff] %v361_v31  ;;  %v175_v43 = vadd.f32 %v521_v2, %v104_v34  ;;  %v106_v45 = vmul.f32 %v516_v1, %v35_v29  ;;  %v43_v15 = vld [vmem:[%s1224_s0 + $0xd0] sm:$0xff]  ;;  %v44_v16 = vld [vmem:[%s1224_s0 + $0xd8] sm:$0xff]  ;;  %v45_v21 = vld [vmem:[%s1224_s0 + $0xe0] sm:$0xff] }
  0x15   :  { %426 = vst [vmem:[%s1228_s4 + $0x58] sm:$0xff] %v362_v32  ;;  %v364_v42 = vmax.f32 %v300_v33, 0.0  ;;  %v107_v46 = vmul.f32 %v516_v1, %v36_v30  ;;  %427 = vst [vmem:[%s1228_s4 + $0x60] sm:$0xff] %v363_v36  ;;  %v176_v51 = vadd.f32 %v521_v2, %v105_v40  ;;  %v108_v54 = vmul.f32 %v516_v1, %v37_v35  ;;  %v247_v25 = vld [vmem:[%s1225_s1 + $0xc0] sm:$0xff]  ;;  %v46_v27 = vld [vmem:[%s1224_s0 + $0xe8] sm:$0xff] }
  0x16   :  { %v365_v49 = vmax.f32 %v301_v37, 0.0  ;;  %v366_v50 = vmax.f32 %v302_v38, 0.0  ;;  %v303_v55 = vadd.f32 %v239_v39, %v175_v43  ;;  %v177_v56 = vadd.f32 %v521_v2, %v106_v45  ;;  %v248_v30 = vld [vmem:[%s1225_s1 + $0xc8] sm:$0xff]  ;;  %v47_v33 = vld [vmem:[%s1224_s0 + $0xf0] sm:$0xff]  ;;  %v48_v34 = vld [vmem:[%s1224_s0 + $0xf8] sm:$0xff] }
  0x17   :  { %428 = vst [vmem:[%s1228_s4 + $0x68] sm:$0xff] %v364_v42  ;;  %v178_v57 = vadd.f32 %v521_v2, %v107_v46  ;;  %v109_v59 = vmul.f32 %v516_v1, %v38_v41  ;;  %v304_v60 = vadd.f32 %v240_v44, %v176_v51  ;;  %v179_v61 = vadd.f32 %v521_v2, %v108_v54  ;;  %v249_v38 = vld [vmem:[%s1225_s1 + $0xd0] sm:$0xff]  ;;  %v250_v39 = vld [vmem:[%s1225_s1 + $0xd8] sm:$0xff]  ;;  %v251_v44 = vld [vmem:[%s1225_s1 + $0xe0] sm:$0xff] }
  0x18   :  { %429 = vst [vmem:[%s1228_s4 + $0x70] sm:$0xff] %v365_v49  ;;  %430 = vst [vmem:[%s1228_s4 + $0x78] sm:$0xff] %v366_v50  ;;  %v110_v63 = vmul.f32 %v516_v1, %v39_v47  ;;  %v111_v0 = vmul.f32 %v516_v1, %v40_v48  ;;  %v367_v4 = vmax.f32 %v303_v55, 0.0  ;;  %v305_v5 = vadd.f32 %v241_v52, %v177_v56  ;;  %v252_v48 = vld [vmem:[%s1225_s1 + $0xe8] sm:$0xff]  ;;  %v49_v51 = vld [vmem:[%s1224_s0 + $0x100] sm:$0xff] }
  0x19   :  { %v306_v6 = vadd.f32 %v242_v53, %v178_v57  ;;  %v180_v7 = vadd.f32 %v521_v2, %v109_v59  ;;  %v368_v11 = vmax.f32 %v304_v60, 0.0  ;;  %v307_v12 = vadd.f32 %v243_v58, %v179_v61  ;;  %v253_v56 = vld [vmem:[%s1225_s1 + $0xf0] sm:$0xff]  ;;  %v254_v57 = vld [vmem:[%s1225_s1 + $0xf8] sm:$0xff]  ;;  %v50_v58 = vld [vmem:[%s1224_s0 + $0x108] sm:$0xff] }
  0x1a   :  { %v181_v13 = vadd.f32 %v521_v2, %v110_v63  ;;  %v182_v14 = vadd.f32 %v521_v2, %v111_v0  ;;  %431 = vst [vmem:[%s1228_s4 + $0x80] sm:$0xff] %v367_v4  ;;  %v369_v17 = vmax.f32 %v305_v5, 0.0  ;;  %v112_v20 = vmul.f32 %v516_v1, %v41_v3  ;;  %v51_v63 = vld [vmem:[%s1224_s0 + $0x110] sm:$0xff]  ;;  %v52_v0 = vld [vmem:[%s1224_s0 + $0x118] sm:$0xff] }
  0x1b   :  { %v370_v18 = vmax.f32 %v306_v6, 0.0  ;;  %v308_v19 = vadd.f32 %v244_v62, %v180_v7  ;;  %432 = vst [vmem:[%s1228_s4 + $0x88] sm:$0xff] %v368_v11  ;;  %v371_v22 = vmax.f32 %v307_v12, 0.0  ;;  %v113_v26 = vmul.f32 %v516_v1, %v42_v10  ;;  %v53_v7 = vld [vmem:[%s1224_s0 + $0x120] sm:$0xff] }
  0x1c   :  { %v309_v23 = vadd.f32 %v245_v8, %v181_v13  ;;  %v310_v24 = vadd.f32 %v246_v9, %v182_v14  ;;  %433 = vst [vmem:[%s1228_s4 + $0x90] sm:$0xff] %v369_v17  ;;  %v183_v29 = vadd.f32 %v521_v2, %v112_v20  ;;  %v114_v31 = vmul.f32 %v516_v1, %v43_v15  ;;  %v255_v11 = vld [vmem:[%s1225_s1 + $0x100] sm:$0xff]  ;;  %v54_v13 = vld [vmem:[%s1224_s0 + $0x128] sm:$0xff]  ;;  %v56_v20 = vld [vmem:[%s1224_s0 + $0x138] sm:$0xff] }
  0x1d   :  { %434 = vst [vmem:[%s1228_s4 + $0x98] sm:$0xff] %v370_v18  ;;  %v372_v28 = vmax.f32 %v308_v19, 0.0  ;;  %v115_v32 = vmul.f32 %v516_v1, %v44_v16  ;;  %435 = vst [vmem:[%s1228_s4 + $0xa0] sm:$0xff] %v371_v22  ;;  %v184_v37 = vadd.f32 %v521_v2, %v113_v26  ;;  %v116_v40 = vmul.f32 %v516_v1, %v45_v21  ;;  %v256_v16 = vld [vmem:[%s1225_s1 + $0x108] sm:$0xff]  ;;  %v55_v19 = vld [vmem:[%s1224_s0 + $0x130] sm:$0xff] }
  0x1e   :  { %v373_v35 = vmax.f32 %v309_v23, 0.0  ;;  %v374_v36 = vmax.f32 %v310_v24, 0.0  ;;  %v311_v41 = vadd.f32 %v247_v25, %v183_v29  ;;  %v185_v42 = vadd.f32 %v521_v2, %v114_v31  ;;  %v257_v24 = vld [vmem:[%s1225_s1 + $0x110] sm:$0xff]  ;;  %v258_v25 = vld [vmem:[%s1225_s1 + $0x118] sm:$0xff] }
  0x1f   :  { %436 = vst [vmem:[%s1228_s4 + $0xa8] sm:$0xff] %v372_v28  ;;  %v186_v43 = vadd.f32 %v521_v2, %v115_v32  ;;  %v117_v45 = vmul.f32 %v516_v1, %v46_v27  ;;  %v312_v46 = vadd.f32 %v248_v30, %v184_v37  ;;  %v187_v47 = vadd.f32 %v521_v2, %v116_v40  ;;  %v259_v30 = vld [vmem:[%s1225_s1 + $0x120] sm:$0xff] }
  0x20   :  { %437 = vst [vmem:[%s1228_s4 + $0xb0] sm:$0xff] %v373_v35  ;;  %438 = vst [vmem:[%s1228_s4 + $0xb8] sm:$0xff] %v374_v36  ;;  %v118_v49 = vmul.f32 %v516_v1, %v47_v33  ;;  %v119_v50 = vmul.f32 %v516_v1, %v48_v34  ;;  %v375_v52 = vmax.f32 %v311_v41, 0.0  ;;  %v313_v53 = vadd.f32 %v249_v38, %v185_v42  ;;  %v260_v34 = vld [vmem:[%s1225_s1 + $0x128] sm:$0xff]  ;;  %v57_v37 = vld [vmem:[%s1224_s0 + $0x140] sm:$0xff] }
  0x21   :  { %v314_v54 = vadd.f32 %v250_v39, %v186_v43  ;;  %v188_v55 = vadd.f32 %v521_v2, %v117_v45  ;;  %v376_v59 = vmax.f32 %v312_v46, 0.0  ;;  %v315_v60 = vadd.f32 %v251_v44, %v187_v47  ;;  %v261_v42 = vld [vmem:[%s1225_s1 + $0x130] sm:$0xff]  ;;  %v262_v43 = vld [vmem:[%s1225_s1 + $0x138] sm:$0xff]  ;;  %v58_v44 = vld [vmem:[%s1224_s0 + $0x148] sm:$0xff] }
  0x22   :  { %v189_v61 = vadd.f32 %v521_v2, %v118_v49  ;;  %v190_v62 = vadd.f32 %v521_v2, %v119_v50  ;;  %439 = vst [vmem:[%s1228_s4 + $0xc0] sm:$0xff] %v375_v52  ;;  %v377_v3 = vmax.f32 %v313_v53, 0.0  ;;  %v120_v6 = vmul.f32 %v516_v1, %v49_v51  ;;  %v59_v49 = vld [vmem:[%s1224_s0 + $0x150] sm:$0xff]  ;;  %v60_v50 = vld [vmem:[%s1224_s0 + $0x158] sm:$0xff] }
  0x23   :  { %v378_v4 = vmax.f32 %v314_v54, 0.0  ;;  %v316_v5 = vadd.f32 %v252_v48, %v188_v55  ;;  %440 = vst [vmem:[%s1228_s4 + $0xc8] sm:$0xff] %v376_v59  ;;  %v379_v8 = vmax.f32 %v315_v60, 0.0  ;;  %v121_v12 = vmul.f32 %v516_v1, %v50_v58  ;;  %v61_v55 = vld [vmem:[%s1224_s0 + $0x160] sm:$0xff] }
  0x24   :  { %v317_v9 = vadd.f32 %v253_v56, %v189_v61  ;;  %v318_v10 = vadd.f32 %v254_v57, %v190_v62  ;;  %441 = vst [vmem:[%s1228_s4 + $0xd0] sm:$0xff] %v377_v3  ;;  %v191_v15 = vadd.f32 %v521_v2, %v120_v6  ;;  %v122_v17 = vmul.f32 %v516_v1, %v51_v63  ;;  %v263_v59 = vld [vmem:[%s1225_s1 + $0x140] sm:$0xff]  ;;  %v62_v61 = vld [vmem:[%s1224_s0 + $0x168] sm:$0xff]  ;;  %v64_v6 = vld [vmem:[%s1224_s0 + $0x178] sm:$0xff] }
  0x25   :  { %442 = vst [vmem:[%s1228_s4 + $0xd8] sm:$0xff] %v378_v4  ;;  %v380_v14 = vmax.f32 %v316_v5, 0.0  ;;  %v123_v18 = vmul.f32 %v516_v1, %v52_v0  ;;  %443 = vst [vmem:[%s1228_s4 + $0xe0] sm:$0xff] %v379_v8  ;;  %v192_v23 = vadd.f32 %v521_v2, %v121_v12  ;;  %v124_v26 = vmul.f32 %v516_v1, %v53_v7  ;;  %v264_v0 = vld [vmem:[%s1225_s1 + $0x148] sm:$0xff]  ;;  %v63_v5 = vld [vmem:[%s1224_s0 + $0x170] sm:$0xff] }
  0x26   :  { %v381_v21 = vmax.f32 %v317_v9, 0.0  ;;  %v382_v22 = vmax.f32 %v318_v10, 0.0  ;;  %v319_v27 = vadd.f32 %v255_v11, %v191_v15  ;;  %v193_v28 = vadd.f32 %v521_v2, %v122_v17  ;;  %v265_v10 = vld [vmem:[%s1225_s1 + $0x150] sm:$0xff]  ;;  %v266_v11 = vld [vmem:[%s1225_s1 + $0x158] sm:$0xff] }
  0x27   :  { %444 = vst [vmem:[%s1228_s4 + $0xe8] sm:$0xff] %v380_v14  ;;  %v194_v29 = vadd.f32 %v521_v2, %v123_v18  ;;  %v125_v31 = vmul.f32 %v516_v1, %v54_v13  ;;  %v320_v32 = vadd.f32 %v256_v16, %v192_v23  ;;  %v195_v33 = vadd.f32 %v521_v2, %v124_v26  ;;  %v267_v16 = vld [vmem:[%s1225_s1 + $0x160] sm:$0xff] }
  0x28   :  { %445 = vst [vmem:[%s1228_s4 + $0xf0] sm:$0xff] %v381_v21  ;;  %446 = vst [vmem:[%s1228_s4 + $0xf8] sm:$0xff] %v382_v22  ;;  %v126_v35 = vmul.f32 %v516_v1, %v55_v19  ;;  %v127_v36 = vmul.f32 %v516_v1, %v56_v20  ;;  %v383_v38 = vmax.f32 %v319_v27, 0.0  ;;  %v321_v39 = vadd.f32 %v257_v24, %v193_v28  ;;  %v268_v20 = vld [vmem:[%s1225_s1 + $0x168] sm:$0xff]  ;;  %v65_v23 = vld [vmem:[%s1224_s0 + $0x180] sm:$0xff] }
  0x29   :  { %v322_v40 = vadd.f32 %v258_v25, %v194_v29  ;;  %v196_v41 = vadd.f32 %v521_v2, %v125_v31  ;;  %v384_v45 = vmax.f32 %v320_v32, 0.0  ;;  %v323_v46 = vadd.f32 %v259_v30, %v195_v33  ;;  %v269_v28 = vld [vmem:[%s1225_s1 + $0x170] sm:$0xff]  ;;  %v270_v29 = vld [vmem:[%s1225_s1 + $0x178] sm:$0xff]  ;;  %v66_v30 = vld [vmem:[%s1224_s0 + $0x188] sm:$0xff] }
  0x2a   :  { %v197_v47 = vadd.f32 %v521_v2, %v126_v35  ;;  %v198_v48 = vadd.f32 %v521_v2, %v127_v36  ;;  %447 = vst [vmem:[%s1228_s4 + $0x100] sm:$0xff] %v383_v38  ;;  %v385_v51 = vmax.f32 %v321_v39, 0.0  ;;  %v128_v54 = vmul.f32 %v516_v1, %v57_v37  ;;  %v67_v35 = vld [vmem:[%s1224_s0 + $0x190] sm:$0xff]  ;;  %v68_v36 = vld [vmem:[%s1224_s0 + $0x198] sm:$0xff] }
  0x2b   :  { %v386_v52 = vmax.f32 %v322_v40, 0.0  ;;  %v324_v53 = vadd.f32 %v260_v34, %v196_v41  ;;  %448 = vst [vmem:[%s1228_s4 + $0x108] sm:$0xff] %v384_v45  ;;  %v387_v56 = vmax.f32 %v323_v46, 0.0  ;;  %v129_v60 = vmul.f32 %v516_v1, %v58_v44  ;;  %v69_v41 = vld [vmem:[%s1224_s0 + $0x1a0] sm:$0xff] }
  0x2c   :  { %v325_v57 = vadd.f32 %v261_v42, %v197_v47  ;;  %v326_v58 = vadd.f32 %v262_v43, %v198_v48  ;;  %449 = vst [vmem:[%s1228_s4 + $0x110] sm:$0xff] %v385_v51  ;;  %v199_v63 = vadd.f32 %v521_v2, %v128_v54  ;;  %v130_v3 = vmul.f32 %v516_v1, %v59_v49  ;;  %v271_v45 = vld [vmem:[%s1225_s1 + $0x180] sm:$0xff]  ;;  %v70_v47 = vld [vmem:[%s1224_s0 + $0x1a8] sm:$0xff]  ;;  %v72_v54 = vld [vmem:[%s1224_s0 + $0x1b8] sm:$0xff] }
  0x2d   :  { %450 = vst [vmem:[%s1228_s4 + $0x118] sm:$0xff] %v386_v52  ;;  %v388_v62 = vmax.f32 %v324_v53, 0.0  ;;  %v131_v4 = vmul.f32 %v516_v1, %v60_v50  ;;  %451 = vst [vmem:[%s1228_s4 + $0x120] sm:$0xff] %v387_v56  ;;  %v200_v9 = vadd.f32 %v521_v2, %v129_v60  ;;  %v132_v12 = vmul.f32 %v516_v1, %v61_v55  ;;  %v272_v50 = vld [vmem:[%s1225_s1 + $0x188] sm:$0xff]  ;;  %v71_v53 = vld [vmem:[%s1224_s0 + $0x1b0] sm:$0xff] }
  0x2e   :  { %v389_v7 = vmax.f32 %v325_v57, 0.0  ;;  %v390_v8 = vmax.f32 %v326_v58, 0.0  ;;  %v327_v13 = vadd.f32 %v263_v59, %v199_v63  ;;  %v201_v14 = vadd.f32 %v521_v2, %v130_v3  ;;  %v273_v58 = vld [vmem:[%s1225_s1 + $0x190] sm:$0xff]  ;;  %v274_v59 = vld [vmem:[%s1225_s1 + $0x198] sm:$0xff] }
  0x2f   :  { %452 = vst [vmem:[%s1228_s4 + $0x128] sm:$0xff] %v388_v62  ;;  %v202_v15 = vadd.f32 %v521_v2, %v131_v4  ;;  %v133_v17 = vmul.f32 %v516_v1, %v62_v61  ;;  %v328_v18 = vadd.f32 %v264_v0, %v200_v9  ;;  %v203_v19 = vadd.f32 %v521_v2, %v132_v12  ;;  %v275_v0 = vld [vmem:[%s1225_s1 + $0x1a0] sm:$0xff] }
  0x30   :  { %453 = vst [vmem:[%s1228_s4 + $0x130] sm:$0xff] %v389_v7  ;;  %454 = vst [vmem:[%s1228_s4 + $0x138] sm:$0xff] %v390_v8  ;;  %v134_v21 = vmul.f32 %v516_v1, %v63_v5  ;;  %v135_v22 = vmul.f32 %v516_v1, %v64_v6  ;;  %v391_v24 = vmax.f32 %v327_v13, 0.0  ;;  %v329_v25 = vadd.f32 %v265_v10, %v201_v14  ;;  %v276_v6 = vld [vmem:[%s1225_s1 + $0x1a8] sm:$0xff]  ;;  %v73_v9 = vld [vmem:[%s1224_s0 + $0x1c0] sm:$0xff] }
  0x31   :  { %v330_v26 = vadd.f32 %v266_v11, %v202_v15  ;;  %v204_v27 = vadd.f32 %v521_v2, %v133_v17  ;;  %v392_v31 = vmax.f32 %v328_v18, 0.0  ;;  %v331_v32 = vadd.f32 %v267_v16, %v203_v19  ;;  %v277_v14 = vld [vmem:[%s1225_s1 + $0x1b0] sm:$0xff]  ;;  %v278_v15 = vld [vmem:[%s1225_s1 + $0x1b8] sm:$0xff]  ;;  %v74_v16 = vld [vmem:[%s1224_s0 + $0x1c8] sm:$0xff] }
  0x32   :  { %v205_v33 = vadd.f32 %v521_v2, %v134_v21  ;;  %v206_v34 = vadd.f32 %v521_v2, %v135_v22  ;;  %455 = vst [vmem:[%s1228_s4 + $0x140] sm:$0xff] %v391_v24  ;;  %v393_v37 = vmax.f32 %v329_v25, 0.0  ;;  %v136_v40 = vmul.f32 %v516_v1, %v65_v23  ;;  %v75_v21 = vld [vmem:[%s1224_s0 + $0x1d0] sm:$0xff]  ;;  %v76_v22 = vld [vmem:[%s1224_s0 + $0x1d8] sm:$0xff] }
  0x33   :  { %v394_v38 = vmax.f32 %v330_v26, 0.0  ;;  %v332_v39 = vadd.f32 %v268_v20, %v204_v27  ;;  %456 = vst [vmem:[%s1228_s4 + $0x148] sm:$0xff] %v392_v31  ;;  %v395_v42 = vmax.f32 %v331_v32, 0.0  ;;  %v137_v46 = vmul.f32 %v516_v1, %v66_v30  ;;  %v77_v27 = vld [vmem:[%s1224_s0 + $0x1e0] sm:$0xff] }
  0x34   :  { %v333_v43 = vadd.f32 %v269_v28, %v205_v33  ;;  %v334_v44 = vadd.f32 %v270_v29, %v206_v34  ;;  %457 = vst [vmem:[%s1228_s4 + $0x150] sm:$0xff] %v393_v37  ;;  %v207_v49 = vadd.f32 %v521_v2, %v136_v40  ;;  %v138_v51 = vmul.f32 %v516_v1, %v67_v35  ;;  %v279_v31 = vld [vmem:[%s1225_s1 + $0x1c0] sm:$0xff]  ;;  %v78_v33 = vld [vmem:[%s1224_s0 + $0x1e8] sm:$0xff]  ;;  %v80_v40 = vld [vmem:[%s1224_s0 + $0x1f8] sm:$0xff] }
  0x35   :  { %458 = vst [vmem:[%s1228_s4 + $0x158] sm:$0xff] %v394_v38  ;;  %v396_v48 = vmax.f32 %v332_v39, 0.0  ;;  %v139_v52 = vmul.f32 %v516_v1, %v68_v36  ;;  %459 = vst [vmem:[%s1228_s4 + $0x160] sm:$0xff] %v395_v42  ;;  %v208_v57 = vadd.f32 %v521_v2, %v137_v46  ;;  %v140_v60 = vmul.f32 %v516_v1, %v69_v41  ;;  %v280_v36 = vld [vmem:[%s1225_s1 + $0x1c8] sm:$0xff]  ;;  %v79_v39 = vld [vmem:[%s1224_s0 + $0x1f0] sm:$0xff] }
  0x36   :  { %v397_v55 = vmax.f32 %v333_v43, 0.0  ;;  %v398_v56 = vmax.f32 %v334_v44, 0.0  ;;  %v335_v61 = vadd.f32 %v271_v45, %v207_v49  ;;  %v209_v62 = vadd.f32 %v521_v2, %v138_v51  ;;  %v281_v44 = vld [vmem:[%s1225_s1 + $0x1d0] sm:$0xff]  ;;  %v282_v45 = vld [vmem:[%s1225_s1 + $0x1d8] sm:$0xff] }
  0x37   :  { %460 = vst [vmem:[%s1228_s4 + $0x168] sm:$0xff] %v396_v48  ;;  %v210_v63 = vadd.f32 %v521_v2, %v139_v52  ;;  %v141_v3 = vmul.f32 %v516_v1, %v70_v47  ;;  %v336_v4 = vadd.f32 %v272_v50, %v208_v57  ;;  %v211_v5 = vadd.f32 %v521_v2, %v140_v60  ;;  %v283_v50 = vld [vmem:[%s1225_s1 + $0x1e0] sm:$0xff] }
  0x38   :  { %461 = vst [vmem:[%s1228_s4 + $0x170] sm:$0xff] %v397_v55  ;;  %462 = vst [vmem:[%s1228_s4 + $0x178] sm:$0xff] %v398_v56  ;;  %v142_v7 = vmul.f32 %v516_v1, %v71_v53  ;;  %v143_v8 = vmul.f32 %v516_v1, %v72_v54  ;;  %v399_v10 = vmax.f32 %v335_v61, 0.0  ;;  %v337_v11 = vadd.f32 %v273_v58, %v209_v62  ;;  %v284_v54 = vld [vmem:[%s1225_s1 + $0x1e8] sm:$0xff]  ;;  %v285_v61 = vld [vmem:[%s1225_s1 + $0x1f0] sm:$0xff] }
  0x39   :  { %v338_v12 = vadd.f32 %v274_v59, %v210_v63  ;;  %v212_v13 = vadd.f32 %v521_v2, %v141_v3  ;;  %v400_v17 = vmax.f32 %v336_v4, 0.0  ;;  %v339_v18 = vadd.f32 %v275_v0, %v211_v5  ;;  %v286_v62 = vld [vmem:[%s1225_s1 + $0x1f8] sm:$0xff] }
  0x3a   :  { %v213_v19 = vadd.f32 %v521_v2, %v142_v7  ;;  %v214_v20 = vadd.f32 %v521_v2, %v143_v8  ;;  %463 = vst [vmem:[%s1228_s4 + $0x180] sm:$0xff] %v399_v10  ;;  %v401_v23 = vmax.f32 %v337_v11, 0.0  ;;  %v144_v26 = vmul.f32 %v516_v1, %v73_v9 }
  0x3b   :  { %v402_v24 = vmax.f32 %v338_v12, 0.0  ;;  %v340_v25 = vadd.f32 %v276_v6, %v212_v13  ;;  %464 = vst [vmem:[%s1228_s4 + $0x188] sm:$0xff] %v400_v17  ;;  %v403_v28 = vmax.f32 %v339_v18, 0.0  ;;  %v145_v32 = vmul.f32 %v516_v1, %v74_v16 }
  0x3c   :  { %v341_v29 = vadd.f32 %v277_v14, %v213_v19  ;;  %v342_v30 = vadd.f32 %v278_v15, %v214_v20  ;;  %465 = vst [vmem:[%s1228_s4 + $0x190] sm:$0xff] %v401_v23  ;;  %v215_v35 = vadd.f32 %v521_v2, %v144_v26  ;;  %v146_v37 = vmul.f32 %v516_v1, %v75_v21 }
  0x3d   :  { %466 = vst [vmem:[%s1228_s4 + $0x198] sm:$0xff] %v402_v24  ;;  %v404_v34 = vmax.f32 %v340_v25, 0.0  ;;  %v147_v38 = vmul.f32 %v516_v1, %v76_v22  ;;  %467 = vst [vmem:[%s1228_s4 + $0x1a0] sm:$0xff] %v403_v28  ;;  %v216_v43 = vadd.f32 %v521_v2, %v145_v32  ;;  %v148_v46 = vmul.f32 %v516_v1, %v77_v27 }
  0x3e   :  { %v405_v41 = vmax.f32 %v341_v29, 0.0  ;;  %v406_v42 = vmax.f32 %v342_v30, 0.0  ;;  %v343_v47 = vadd.f32 %v279_v31, %v215_v35  ;;  %v217_v48 = vadd.f32 %v521_v2, %v146_v37 }
  0x3f   :  { %468 = vst [vmem:[%s1228_s4 + $0x1a8] sm:$0xff] %v404_v34  ;;  %v218_v49 = vadd.f32 %v521_v2, %v147_v38  ;;  %v149_v51 = vmul.f32 %v516_v1, %v78_v33  ;;  %v344_v52 = vadd.f32 %v280_v36, %v216_v43  ;;  %v219_v53 = vadd.f32 %v521_v2, %v148_v46 }
  0x40   :  { %469 = vst [vmem:[%s1228_s4 + $0x1b0] sm:$0xff] %v405_v41  ;;  %470 = vst [vmem:[%s1228_s4 + $0x1b8] sm:$0xff] %v406_v42  ;;  %v150_v55 = vmul.f32 %v516_v1, %v79_v39  ;;  %v151_v56 = vmul.f32 %v516_v1, %v80_v40  ;;  %v407_v57 = vmax.f32 %v343_v47, 0.0  ;;  %v345_v58 = vadd.f32 %v281_v44, %v217_v48 }
  0x41   :  { %v346_v59 = vadd.f32 %v282_v45, %v218_v49  ;;  %v220_v60 = vadd.f32 %v521_v2, %v149_v51  ;;  %v408_v63 = vmax.f32 %v344_v52, 0.0  ;;  %v347_v0 = vadd.f32 %v283_v50, %v219_v53 }
  0x42   :  { %v221_v3 = vadd.f32 %v521_v2, %v150_v55  ;;  %v222_v4 = vadd.f32 %v521_v2, %v151_v56  ;;  %471 = vst [vmem:[%s1228_s4 + $0x1c0] sm:$0xff] %v407_v57  ;;  %v409_v1 = vmax.f32 %v345_v58, 0.0 }
  0x43   :  { %v410_v5 = vmax.f32 %v346_v59, 0.0  ;;  %v348_v6 = vadd.f32 %v284_v54, %v220_v60  ;;  %472 = vst [vmem:[%s1228_s4 + $0x1c8] sm:$0xff] %v408_v63  ;;  %v411_v7 = vmax.f32 %v347_v0, 0.0 }
  0x44   :  { %v349_v8 = vadd.f32 %v285_v61, %v221_v3  ;;  %v350_v9 = vadd.f32 %v286_v62, %v222_v4  ;;  %473 = vst [vmem:[%s1228_s4 + $0x1d0] sm:$0xff] %v409_v1 }
  0x45   :  { %474 = vst [vmem:[%s1228_s4 + $0x1d8] sm:$0xff] %v410_v5  ;;  %v412_v2 = vmax.f32 %v348_v6, 0.0  ;;  %475 = vst [vmem:[%s1228_s4 + $0x1e0] sm:$0xff] %v411_v7 }
  0x46   :  { %v413_v10 = vmax.f32 %v349_v8, 0.0  ;;  %v414_v11 = vmax.f32 %v350_v9, 0.0 }
  0x47   :  { %476 = vst [vmem:[%s1228_s4 + $0x1e8] sm:$0xff] %v412_v2 }
  0x48   :  { %477 = vst [vmem:[%s1228_s4 + $0x1f0] sm:$0xff] %v413_v10  ;;  %478 = vst [vmem:[%s1228_s4 + $0x1f8] sm:$0xff] %v414_v11 }

// kernel: basic_block_forward.4
= control target key start
LH: loop header
LB: loop body
LE: loop exit
PB: predicated region body
PF: predicated region fallthrough
CT: control target
= control target key end

     0   :  { %s1959_s12 = smov 0   ;;  %s1961_s13 = smov 0   ;;  %s2801_s0 = inlined_call_operand.vmem [shape: f32[2,18,18,128], index: 0, kind: input, shape index: {}]   ;;  %s2802_s1 = inlined_call_operand.vmem [shape: f32[1152,128], index: 1, kind: input, shape index: {}]   ;;  %s2803_s2 = inlined_call_operand.vmem [shape: f32[2,16,16,128], index: 2, kind: output, shape index: {0}]   ;;  %s2804_s3 = inlined_call_operand.vmem [shape: f32[2,4,2,128], index: 3, kind: output, shape index: {1}]  }
   0x1   :  { %s1963_s14 = smov 0   ;;  %s1965_s15 = smov 0  }
   0x2   :  { %s1967_s16 = smov 0  }
   0x3 LB: > { %s23_s17 = sadd.s32 1, %s1929_s14  ;;  %s26_s18 = sadd.s32 1, %s1933_s15  ;;  %s1937_s16 = sphi %s1967_s16, %s14_s16   ;;  %s1933_s15 = sphi %s1965_s15, %s2808_s15   ;;  %s1929_s14 = sphi %s1963_s14, %s2807_s14   ;;  %s1925_s13 = sphi %s1961_s13, %s2806_s13   ;;  %s1921_s12 = sphi %s1959_s12, %s2805_s12  }
   0x4   : > { %p24_p0 = scmp.ge.s32.totalorder %s23_s17, 4  ;;  %p1446_p1 = scmp.ge.s32.totalorder %s1937_s16, 1 }
   0x5   : > { %p156_p2 = scmp.lt.s32.totalorder %s1937_s16, 9 }
   0x6   : > { %s2810_s17 = smov (%p24_p0, %s23_s17), 0  ;;  %s2812_s18 = smov (!%p24_p0, %s26_s18), %s1933_s15 }
   0x7   : > { %p157_p3 = pnand %p1446_p1, %p156_p2  ;;  %p28_p4 = scmp.ge.s32.totalorder %s2812_s18, 2 }
   0x8   : > { %p193_p5 = scmp.lt.s32.totalorder (!%p157_p3), %s1925_s13, 1  ;;  %s1455_s30 = smul.u32 (!%p157_p3), 96, %s1921_s12 }
   0x9   : > { %s2814_s18 = smov (%p28_p4, %s2812_s18), 0  ;;  %160 = sbr.rel (%p157_p3) target bundleno = 382 (0x17e), region = 28 }
   0xa   : > { %s1448_s20 = sshll.u32 (!%p157_p3), %s1921_s12, 2  ;;  %p211_p7 = scmp.lt.s32.totalorder (!%p157_p3), %s1921_s12, 3 }
   0xb   : > { %p201_p6 = scmp.lt.s32.totalorder (!%p157_p3), %s1448_s20, 15 }
   0xe   : > { %v464_v0 = vld [vmem:[%s2802_s1 + $0x278] sm:$0xff]  ;;  %v463_v2 = vld [vmem:[%s2802_s1 + $0x270] sm:$0xff]  ;;  %v462_v5 = vld [vmem:[%s2802_s1 + $0x268] sm:$0xff]  ;;  %s2816_s13 = smov (!%p193_p5, %s1925_s13), 1  ;;  %vm244_vm0 = vcmask 1046528   ;;  %vm273_vm1 = vcmask 1045504  }
   0xf   : > { %v448_v1 = vld [vmem:[%s2802_s1 + $0x1f8] sm:$0xff]  ;;  %1486 = vmatprep.subr.mxu0 %v464_v0  ;;  %v447_v4 = vld [vmem:[%s2802_s1 + $0x1f0] sm:$0xff]  ;;  %v446_v7 = vld [vmem:[%s2802_s1 + $0x1e8] sm:$0xff]  ;;  %s1858_s21 = smul.u32 432, %s2816_s13  ;;  %s2818_s20 = smov (!%p201_p6, %s1448_s20), 15  ;;  %vm1292_vm2 = vcmask 1040384  }
  0x10   : > { %v480_v3 = vld [vmem:[%s2802_s1 + $0x2f8] sm:$0xff]  ;;  %1487 = vmatpush3.msra.mxu0 %v448_v1  ;;  %v479_v6 = vld [vmem:[%s2802_s1 + $0x2f0] sm:$0xff]  ;;  %v478_v8 = vld [vmem:[%s2802_s1 + $0x2e8] sm:$0xff]  ;;  %s1449_s22 = sshll.u32 %s2818_s20, 1  ;;  %s1450_s23 = sshll.u32 %s2816_s13, 5 }
  0x11   : > { %1726 = vmatprep.subr.mxu1 %v480_v3  ;;  %1488 = vmatprep.subr.mxu0 %v463_v2  ;;  %v461_v9 = vld [vmem:[%s2802_s1 + $0x260] sm:$0xff]  ;;  %v460_v12 = vld [vmem:[%s2802_s1 + $0x258] sm:$0xff]  ;;  %v459_v15 = vld [vmem:[%s2802_s1 + $0x250] sm:$0xff]  ;;  %s197_s10 = scalar_lea.vmem %s2801_s0, %s1858_s21  ;;  %s205_s24 = sadd.s32 %s1450_s23, %s1449_s22 }
  0x12   : > { %1727 = vmatpush3.msra.mxu1 %v480_v3  ;;  %1489 = vmatpush3.msra.mxu0 %v447_v4  ;;  %v445_v10 = vld [vmem:[%s2802_s1 + $0x1e0] sm:$0xff]  ;;  %v444_v13 = vld [vmem:[%s2802_s1 + $0x1d8] sm:$0xff]  ;;  %v443_v16 = vld [vmem:[%s2802_s1 + $0x1d0] sm:$0xff]  ;;  %s2097_s26 = scalar_lea.vmem %s197_s10, %s1455_s30  ;;  %s1451_s25 = sshll.u32 %s205_s24, 3 }
  0x13   : > { %1728 = vmatprep.subr.mxu1 %v479_v6  ;;  %1490 = vmatprep.subr.mxu0 %v462_v5  ;;  %v477_v11 = vld [vmem:[%s2802_s1 + $0x2e0] sm:$0xff]  ;;  %v476_v14 = vld [vmem:[%s2802_s1 + $0x2d8] sm:$0xff]  ;;  %v475_v17 = vld [vmem:[%s2802_s1 + $0x2d0] sm:$0xff]  ;;  %s2744_s27 = scalar_lea.vmem %s2803_s2, %s1451_s25  ;;  %s2820_s12 = smov (!%p211_p7, %s1921_s12), 3 }
  0x14   : > { %1729 = vmatpush3.msra.mxu1 %v479_v6  ;;  %1491 = vmatpush3.msra.mxu0 %v446_v7  ;;  %v458_v18 = vld [vmem:[%s2802_s1 + $0x248] sm:$0xff]  ;;  %v457_v21 = vld [vmem:[%s2802_s1 + $0x240] sm:$0xff]  ;;  %v456_v24 = vld [vmem:[%s2802_s1 + $0x238] sm:$0xff]  ;;  %s1452_s28 = sshll.u32 %s2816_s13, 2 }
  0x15   : > { %1730 = vmatprep.subr.mxu1 %v478_v8  ;;  %1492 = vmatprep.subr.mxu0 %v461_v9  ;;  %v442_v19 = vld [vmem:[%s2802_s1 + $0x1c8] sm:$0xff]  ;;  %v441_v22 = vld [vmem:[%s2802_s1 + $0x1c0] sm:$0xff]  ;;  %v440_v25 = vld [vmem:[%s2802_s1 + $0x1b8] sm:$0xff]  ;;  %s214_s29 = sadd.s32 %s1452_s28, %s2820_s12 }
  0x16   : > { %1731 = vmatpush3.msra.mxu1 %v478_v8  ;;  %1493 = vmatpush3.msra.mxu0 %v445_v10  ;;  %v474_v20 = vld [vmem:[%s2802_s1 + $0x2c8] sm:$0xff]  ;;  %v473_v23 = vld [vmem:[%s2802_s1 + $0x2c0] sm:$0xff]  ;;  %v472_v26 = vld [vmem:[%s2802_s1 + $0x2b8] sm:$0xff]  ;;  %s1453_s4 = sshll.u32 %s214_s29, 1 }
  0x17   : > { %1732 = vmatprep.subr.mxu1 %v477_v11  ;;  %1494 = vmatprep.subr.mxu0 %v460_v12  ;;  %v455_v27 = vld [vmem:[%s2802_s1 + $0x230] sm:$0xff]  ;;  %v454_v30 = vld [vmem:[%s2802_s1 + $0x228] sm:$0xff]  ;;  %v453_v33 = vld [vmem:[%s2802_s1 + $0x220] sm:$0xff]  ;;  %s216_s30 = scalar_lea.vmem %s2804_s3, %s1453_s4 }
  0x18   : > { %1733 = vmatpush3.msra.mxu1 %v477_v11  ;;  %1495 = vmatpush3.msra.mxu0 %v444_v13  ;;  %v439_v28 = vld [vmem:[%s2802_s1 + $0x1b0] sm:$0xff]  ;;  %v438_v31 = vld [vmem:[%s2802_s1 + $0x1a8] sm:$0xff]  ;;  %v437_v34 = vld [vmem:[%s2802_s1 + $0x1a0] sm:$0xff] }
  0x19   : > { %1734 = vmatprep.subr.mxu1 %v476_v14  ;;  %1496 = vmatprep.subr.mxu0 %v459_v15  ;;  %v471_v29 = vld [vmem:[%s2802_s1 + $0x2b0] sm:$0xff]  ;;  %v470_v32 = vld [vmem:[%s2802_s1 + $0x2a8] sm:$0xff]  ;;  %v469_v35 = vld [vmem:[%s2802_s1 + $0x2a0] sm:$0xff] }
  0x1a   : > { %1735 = vmatpush3.msra.mxu1 %v476_v14  ;;  %1497 = vmatpush3.msra.mxu0 %v443_v16  ;;  %v2115_v36 = vld [vmem:[%s2097_s26 + $0x18] sm:$0xff]  ;;  %v2118_v37 = vld [vmem:[%s2097_s26 + $0x20] sm:$0xff]  ;;  %v451_v41 = vld [vmem:[%s2802_s1 + $0x210] sm:$0xff] }
  0x1b   : > { %1736 = vmatprep.subr.mxu1 %v475_v17  ;;  %1498 = vmatprep.subr.mxu0 %v458_v18  ;;  %v452_v38 = vld [vmem:[%s2802_s1 + $0x218] sm:$0xff]  ;;  %v377_v42 = vrot.slane %v2115_v36, 1  ;;  %v2134_v43 = vrot.slane %v2118_v37, 1  ;;  %v435_v44 = vld [vmem:[%s2802_s1 + $0x190] sm:$0xff]  ;;  %v450_v46 = vld [vmem:[%s2802_s1 + $0x208] sm:$0xff]  ;;  %v405_v52 = vrot.slane %v2115_v36, 2 }
  0x1c   : > { %1737 = vmatpush3.msra.mxu1 %v475_v17  ;;  %1499 = vmatpush3.msra.mxu0 %v442_v19  ;;  %v436_v39 = vld [vmem:[%s2802_s1 + $0x198] sm:$0xff]  ;;  %v467_v45 = vld [vmem:[%s2802_s1 + $0x290] sm:$0xff]  ;;  %v1460_v47 = vld [vmem:[%s2097_s26 + $0x28] sm:$0x3]  ;;  %v2161_v53 = vrot.slane %v2118_v37, 2 }
  0x1d   : > { %1738 = vmatprep.subr.mxu1 %v474_v20  ;;  %1500 = vmatprep.subr.mxu0 %v457_v21  ;;  %v468_v40 = vld [vmem:[%s2802_s1 + $0x298] sm:$0xff]  ;;  %v434_v48 = vld [vmem:[%s2802_s1 + $0x188] sm:$0xff]  ;;  %v449_v50 = vld [vmem:[%s2802_s1 + $0x200] sm:$0xff]  ;;  %v2157_v51 = vsel %vm244_vm0, %v377_v42, %v2134_v43  ;;  %v408_v55 = vrot.slane %v1460_v47, 2  ;;  %v380_v57 = vrot.slane %v1460_v47, 1 }
  0x1e   : > { %1739 = vmatpush3.msra.mxu1 %v474_v20  ;;  %1501 = vmatpush3.msra.mxu0 %v441_v22  ;;  %v466_v49 = vld [vmem:[%s2802_s1 + $0x288] sm:$0xff]  ;;  %v433_v54 = vld [vmem:[%s2802_s1 + $0x180] sm:$0xff]  ;;  %v333_v58 = vld [vmem:[%s2802_s1 + $0xf8] sm:$0xff]  ;;  %v2175_v59 = vsel %vm273_vm1, %v405_v52, %v2161_v53 }
  0x1f   : > { %1740 = vmatprep.subr.mxu1 %v473_v23  ;;  %1502 = vmatprep.subr.mxu0 %v456_v24  ;;  %v465_v56 = vld [vmem:[%s2802_s1 + $0x280] sm:$0xff]  ;;  %v317_v60 = vld [vmem:[%s2802_s1 + $0x78] sm:$0xff]  ;;  %v2181_v61 = vld [vmem:[%s2097_s26 + $0x30] sm:$0xff]  ;;  %v409_v63 = vsel %vm273_vm1, %v2161_v53, %v408_v55  ;;  %v381_v2 = vsel %vm244_vm0, %v2134_v43, %v380_v57 }
  0x20   : > { %1741 = vmatpush3.msra.mxu1 %v473_v23  ;;  %1503 = vmatpush3.msra.mxu0 %v440_v25  ;;  %v2184_v62 = vld [vmem:[%s2097_s26 + $0x38] sm:$0xff]  ;;  %v332_v0 = vld [vmem:[%s2802_s1 + $0xf0] sm:$0xff]  ;;  %v382_v4 = vrot.slane %v2181_v61, 1  ;;  %v331_v6 = vld [vmem:[%s2802_s1 + $0xe8] sm:$0xff]  ;;  %v410_v11 = vrot.slane %v2181_v61, 2 }
  0x21   : > { %1742 = vmatprep.subr.mxu1 %v472_v26  ;;  %1504 = vmatprep.subr.mxu0 %v455_v27  ;;  %v349_v1 = vld [vmem:[%s2802_s1 + $0x178] sm:$0xff]  ;;  %v316_v3 = vld [vmem:[%s2802_s1 + $0x70] sm:$0xff]  ;;  %v2203_v5 = vrot.slane %v2184_v62, 1  ;;  %v315_v8 = vld [vmem:[%s2802_s1 + $0x68] sm:$0xff]  ;;  %v2220_v12 = vrot.slane %v2184_v62, 2 }
  0x22   : > { %1743 = vmatpush3.msra.mxu1 %v472_v26  ;;  %1505 = vmatpush3.msra.mxu0 %v439_v28  ;;  %v348_v7 = vld [vmem:[%s2802_s1 + $0x170] sm:$0xff]  ;;  %v1463_v9 = vld [vmem:[%s2097_s26 + $0x40] sm:$0x3]  ;;  %v347_v13 = vld [vmem:[%s2802_s1 + $0x168] sm:$0xff] }
  0x23   : > { %1744 = vmatprep.subr.mxu1 %v471_v29  ;;  %1506 = vmatprep.subr.mxu0 %v454_v30  ;;  %v330_v10 = vld [vmem:[%s2802_s1 + $0xe0] sm:$0xff]  ;;  %v2228_v14 = vsel %vm244_vm0, %v382_v4, %v2203_v5  ;;  %v413_v16 = vrot.slane %v1463_v9, 2  ;;  %v329_v17 = vld [vmem:[%s2802_s1 + $0xd8] sm:$0xff]  ;;  %v385_v18 = vrot.slane %v1463_v9, 1  ;;  %v2242_v20 = vsel %vm273_vm1, %v410_v11, %v2220_v12  ;;  %v2248_v22 = vld [vmem:[%s2097_s26 + $0x48] sm:$0xff] }
  0x24   : > { %1745 = vmatpush3.msra.mxu1 %v471_v29  ;;  %1507 = vmatpush3.msra.mxu0 %v438_v31  ;;  %v314_v15 = vld [vmem:[%s2802_s1 + $0x60] sm:$0xff]  ;;  %v313_v21 = vld [vmem:[%s2802_s1 + $0x58] sm:$0xff]  ;;  %v2251_v23 = vld [vmem:[%s2097_s26 + $0x50] sm:$0xff]  ;;  %v387_v29 = vrot.slane %v2248_v22, 1 }
  0x25   : > { %1746 = vmatprep.subr.mxu1 %v470_v32  ;;  %1508 = vmatprep.subr.mxu0 %v453_v33  ;;  %v346_v19 = vld [vmem:[%s2802_s1 + $0x160] sm:$0xff]  ;;  %v414_v24 = vsel %vm273_vm1, %v2220_v12, %v413_v16  ;;  %v328_v25 = vld [vmem:[%s2802_s1 + $0xd0] sm:$0xff]  ;;  %v345_v26 = vld [vmem:[%s2802_s1 + $0x158] sm:$0xff]  ;;  %v386_v27 = vsel %vm244_vm0, %v2203_v5, %v385_v18  ;;  %v2270_v30 = vrot.slane %v2251_v23, 1 }
  0x26   : > { %1747 = vmatpush3.msra.mxu1 %v470_v32  ;;  %1509 = vmatpush3.msra.mxu0 %v437_v34  ;;  %v312_v28 = vld [vmem:[%s2802_s1 + $0x50] sm:$0xff]  ;;  %v1466_v31 = vld [vmem:[%s2097_s26 + $0x58] sm:$0x3]  ;;  %v228_v32 = vld [vmem:[%s2097_s26 + $0x40] sm:$0x3] }
  0x27   : > { %1748 = vmatprep.subr.mxu1 %v469_v35  ;;  %1510 = vmatprep.subr.mxu0 %v452_v38  ;;  %v327_v33 = vld [vmem:[%s2802_s1 + $0xc8] sm:$0xff]  ;;  %v258_v34 = vrot.slane %v228_v32, 1  ;;  %v344_v38 = vld [vmem:[%s2802_s1 + $0x150] sm:$0xff]  ;;  %v326_v42 = vld [vmem:[%s2802_s1 + $0xc0] sm:$0xff] }
  0x28   : > { %1749 = vmatpush3.msra.mxu1 %v469_v35  ;;  %1511 = vmatpush3.msra.mxu0 %v436_v39  ;;  %v287_v35 = vrot.slane %v228_v32, 2  ;;  %v311_v39 = vld [vmem:[%s2802_s1 + $0x48] sm:$0xff]  ;;  %v231_v55 = vld [vmem:[%s2097_s26 + $0x58] sm:$0x3]  ;;  %v1474_v11 = vld [vmem:[%s2097_s26 + $0x40] sm:$0x3] }
  0x29   : > { %1750 = vmatprep.subr.mxu1 %v468_v40  ;;  %1512 = vmatprep.subr.mxu0 %v451_v41  ;;  %v2285_v41 = vrot.slane %v2251_v23, 2  ;;  %v343_v47 = vld [vmem:[%s2802_s1 + $0x148] sm:$0xff]  ;;  %v959_v16 = vrot.slane %v1474_v11, 2 }
  0x2a   : > { %1751 = vmatpush3.msra.mxu1 %v468_v40  ;;  %1513 = vmatpush3.msra.mxu0 %v435_v44  ;;  %v415_v40 = vrot.slane %v2248_v22, 2  ;;  %v418_v44 = vrot.slane %v1466_v31, 2  ;;  %v2310_v52 = vld [vmem:[%s2097_s26 + $0x68] sm:$0xff] }
  0x2b   : > { %1752 = vmatprep.subr.mxu1 %v467_v45  ;;  %1514 = vmatprep.subr.mxu0 %v450_v46  ;;  %v2296_v46 = vsel %vm273_vm1, %v2220_v12, %v287_v35  ;;  %v2337_v4 = vrot.slane %v2310_v52, 1  ;;  %v2374_v32 = vsel %vm273_vm1, %v2220_v12, %v959_v16  ;;  %v320_v16 = vld [vmem:[%s2802_s1 + $0x90] sm:$0xff] }
  0x2c   : > { %1753 = vmatpush3.msra.mxu1 %v467_v45  ;;  %1515 = vmatpush3.msra.mxu0 %v434_v48  ;;  %v2292_v45 = vsel %vm244_vm0, %v2203_v5, %v258_v34  ;;  %v2304_v48 = vsel %vm244_vm0, %v387_v29, %v2270_v30  ;;  %v2321_v57 = vsel %vm273_vm1, %v415_v40, %v2285_v41  ;;  %v1483_v29 = vld [vmem:[%s2097_s26 + $0x88] sm:$0x3] }
  0x2d   : > { %1754 = vmatprep.subr.mxu1 %v466_v49  ;;  %1516 = vmatprep.subr.mxu0 %v449_v50  ;;  %v2307_v50 = vld [vmem:[%s2097_s26 + $0x60] sm:$0xff] }
  0x2e   : > { %545 = vmatprep.mubr.f32.mxu0 %v2157_v51  ;;  %1517 = vmatpush3.msra.mxu0 %v433_v54  ;;  %v310_v54 = vld [vmem:[%s2802_s1 + $0x40] sm:$0xff] }
  0x2f   : > { %1755 = vmatpush3.msra.mxu1 %v466_v49  ;;  %546 = vmatmul.mubr.f32.vlgmr.msra.gmra.mxu0 %v2115_v36  ;;  %v390_v49 = vrot.slane %v1466_v31, 1  ;;  %v308_v31 = vld [vmem:[%s2802_s1 + $0x30] sm:$0xff] }
  0x30   : > { %1756 = vmatprep.subr.mxu1 %v465_v56  ;;  %1566 = vmatprep.subr.mxu0 %v333_v58  ;;  %v263_v58 = vrot.slane %v231_v55, 1 }
  0x31   : > { %1757 = vmatpush3.msra.mxu1 %v465_v56  ;;  %1758 = vmatprep.mubr.f32.mxu1 %v2175_v59  ;;  %v325_v56 = vld [vmem:[%s2802_s1 + $0xb8] sm:$0xff] }
  0x32   : > { %1567 = vmatpush3.msra.mxu0 %v317_v60  ;;  %1759 = vmatmul.mubr.f32.vlgmr.msra.gmra.mxu1 %v409_v63  ;;  %v292_v60 = vrot.slane %v231_v55, 2  ;;  %v342_v63 = vld [vmem:[%s2802_s1 + $0x140] sm:$0xff]  ;;  %v2349_v9 = vsel %vm244_vm0, %v2270_v30, %v263_v58  ;;  %v420_v55 = vrot.slane %v2307_v50, 2  ;;  %v339_v58 = vld [vmem:[%s2802_s1 + $0x128] sm:$0xff] }
  0x33   : > { %1568 = vmatprep.subr.mxu0 %v332_v0  ;;  %1770 = vmatprep.subr.mxu1 %v349_v1  ;;  %v309_v0 = vld [vmem:[%s2802_s1 + $0x38] sm:$0xff] }
  0x34   : > { %550 = vmatprep.mubr.f32.mxu0 %v381_v2  ;;  %1569 = vmatpush3.msra.mxu0 %v316_v3  ;;  %v324_v2 = vld [vmem:[%s2802_s1 + $0xb0] sm:$0xff]  ;;  %v392_v3 = vrot.slane %v2307_v50, 1 }
  0x35   : > { %1771 = vmatpush3.msra.mxu1 %v349_v1  ;;  %551 = vmatmul.mubr.f32.gmra.mxu0 %v2118_v37  ;;  %v419_v1 = vsel %vm273_vm1, %v2285_v41, %v418_v44 }
  0x36   : > { %1570 = vmatprep.subr.mxu0 %v331_v6  ;;  %1772 = vmatprep.subr.mxu1 %v348_v7  ;;  %v2340_v6 = vrot.slane %v2310_v52, 2 }
  0x37   : > { %1571 = vmatpush3.msra.mxu0 %v315_v8  ;;  %1773 = vmatpush3.msra.mxu1 %v348_v7  ;;  %v341_v7 = vld [vmem:[%s2802_s1 + $0x138] sm:$0xff]  ;;  %v391_v8 = vsel %vm244_vm0, %v2270_v30, %v390_v49  ;;  %v946_v49 = vrot.slane %v1483_v29, 1 }
  0x38   : > { %1572 = vmatprep.subr.mxu0 %v330_v10  ;;  %1774 = vmatprep.subr.mxu1 %v347_v13  ;;  %v2353_v10 = vsel %vm273_vm1, %v2285_v41, %v292_v60  ;;  %v2424_v60 = vsel %vm244_vm0, %v392_v3, %v2337_v4  ;;  %v321_v3 = vld [vmem:[%s2802_s1 + $0x98] sm:$0xff] }
  0x39   : > { %555 = vmatprep.mubr.f32.mxu0 %v2228_v14  ;;  %1573 = vmatpush3.msra.mxu0 %v314_v15  ;;  %v1480_v15 = vld [vmem:[%s2097_s26 + $0x70] sm:$0x3] }
  0x3a   : > { %1775 = vmatpush3.msra.mxu1 %v347_v13  ;;  %556 = vmatmul.mubr.f32.gmra.mxu0 %v2181_v61  ;;  %v1477_v13 = vld [vmem:[%s2097_s26 + $0x58] sm:$0x3] }
  0x3b   : > { %1574 = vmatprep.subr.mxu0 %v329_v17  ;;  %1776 = vmatprep.subr.mxu1 %v346_v19  ;;  %v931_v17 = vrot.slane %v1474_v11, 1  ;;  %v964_v18 = vrot.slane %v1477_v13, 2  ;;  %v2444_v11 = vsel %vm273_vm1, %v420_v55, %v2340_v6  ;;  %v1015_v55 = vld [vmem:[%s2802_s1 + $0x3f8] sm:$0xff] }
  0x3c   : > { %1761 = vmatprep.mubr.f32.mxu1 %v2242_v20  ;;  %1575 = vmatpush3.msra.mxu0 %v313_v21  ;;  %v2360_v21 = vld [vmem:[%s2097_s26 + $0x78] sm:$0xff] }
  0x3d   : > { %1777 = vmatpush3.msra.mxu1 %v346_v19  ;;  %1576 = vmatprep.subr.mxu0 %v328_v25  ;;  %v936_v19 = vrot.slane %v1477_v13, 1  ;;  %v969_v25 = vrot.slane %v1480_v15, 2  ;;  %v2382_v34 = vsel %vm273_vm1, %v2285_v41, %v964_v18  ;;  %v971_v35 = vrot.slane %v2360_v21, 2  ;;  %v340_v41 = vld [vmem:[%s2802_s1 + $0x130] sm:$0xff]  ;;  %v305_v13 = vld [vmem:[%s2802_s1 + $0x18] sm:$0xff]  ;;  %v2457_v18 = vld [vmem:[%s2097_s26 + $0x8] sm:$0xff] }
  0x3e   : > { %1762 = vmatmul.mubr.f32.gmra.mxu1 %v414_v24  ;;  %1778 = vmatprep.subr.mxu1 %v345_v26  ;;  %v2363_v24 = vld [vmem:[%s2097_s26 + $0x80] sm:$0xff] }
  0x3f   : > { %560 = vmatprep.mubr.f32.mxu0 %v386_v27  ;;  %1577 = vmatpush3.msra.mxu0 %v312_v28  ;;  %v943_v27 = vrot.slane %v2360_v21, 1  ;;  %v944_v28 = vrot.slane %v2363_v24, 1  ;;  %v2390_v12 = vsel %vm244_vm0, %v2270_v30, %v936_v19  ;;  %v972_v40 = vrot.slane %v2363_v24, 2  ;;  %v307_v30 = vld [vmem:[%s2802_s1 + $0x28] sm:$0xff]  ;;  %v337_v19 = vld [vmem:[%s2802_s1 + $0x118] sm:$0xff] }
  0x40   : > { %1779 = vmatpush3.msra.mxu1 %v345_v26  ;;  %561 = vmatmul.mubr.f32.gmra.mxu0 %v2184_v62  ;;  %v941_v26 = vrot.slane %v1480_v15, 1 }
  0x41   : > { %1578 = vmatprep.subr.mxu0 %v327_v33  ;;  %1780 = vmatprep.subr.mxu1 %v344_v38  ;;  %v2378_v33 = vsel %vm244_vm0, %v2203_v5, %v931_v17  ;;  %v2394_v5 = vsel %vm273_vm1, %v2340_v6, %v969_v25  ;;  %v2409_v44 = vsel %vm244_vm0, %v943_v27, %v944_v28  ;;  %v220_v17 = vld [vmem:[%s2097_s26] sm:$0xff] }
  0x42   : > { %1579 = vmatpush3.msra.mxu0 %v311_v39  ;;  %1781 = vmatpush3.msra.mxu1 %v344_v38  ;;  %v323_v38 = vld [vmem:[%s2802_s1 + $0xa8] sm:$0xff]  ;;  %v2398_v39 = vsel %vm244_vm0, %v2337_v4, %v941_v26  ;;  %v245_v27 = vrot.slane %v220_v17, 1 }
  0x43   : > { %1580 = vmatprep.subr.mxu0 %v326_v42  ;;  %1782 = vmatprep.subr.mxu1 %v343_v47  ;;  %v1469_v42 = vld [vmem:[%s2097_s26 + $0x70] sm:$0x3]  ;;  %v319_v26 = vld [vmem:[%s2802_s1 + $0x88] sm:$0xff] }
  0x44   : > { %565 = vmatprep.mubr.f32.mxu0 %v2304_v48  ;;  %1581 = vmatpush3.msra.mxu0 %v310_v54  ;;  %v322_v54 = vld [vmem:[%s2802_s1 + $0xa0] sm:$0xff] }
  0x45   : > { %1783 = vmatpush3.msra.mxu1 %v343_v47  ;;  %566 = vmatmul.mubr.f32.gmra.mxu0 %v2248_v22  ;;  %v974_v47 = vrot.slane %v1483_v29, 2  ;;  %v303_v29 = vld [vmem:[%s2802_s1 + $0x8] sm:$0xff] }
  0x46   : > { %1582 = vmatprep.subr.mxu0 %v325_v56  ;;  %1784 = vmatprep.subr.mxu1 %v342_v63  ;;  %v2416_v56 = vsel %vm273_vm1, %v971_v35, %v972_v40  ;;  %v222_v35 = vld [vmem:[%s2097_s26 + $0x10] sm:$0x3] }
  0x47   : > { %1764 = vmatprep.mubr.f32.mxu1 %v2321_v57  ;;  %1583 = vmatpush3.msra.mxu0 %v309_v0  ;;  %v2430_v0 = vsel %vm244_vm0, %v944_v28, %v946_v49  ;;  %v246_v28 = vrot.slane %v2457_v18, 1  ;;  %v248_v49 = vrot.slane %v222_v35, 1 }
  0x48   : > { %1785 = vmatpush3.msra.mxu1 %v342_v63  ;;  %1584 = vmatprep.subr.mxu0 %v324_v2  ;;  %v2427_v63 = vsel %vm273_vm1, %v972_v40, %v974_v47  ;;  %v423_v2 = vrot.slane %v1469_v42, 2  ;;  %v302_v40 = vld [vmem:[%s2802_s1] sm:$0xff] }
  0x49   : > { %1765 = vmatmul.mubr.f32.gmra.mxu1 %v419_v1  ;;  %1786 = vmatprep.subr.mxu1 %v341_v7  ;;  %v306_v1 = vld [vmem:[%s2802_s1 + $0x20] sm:$0xff] }
  0x4a   : > { %570 = vmatprep.mubr.f32.mxu0 %v391_v8  ;;  %1585 = vmatpush3.msra.mxu0 %v308_v31  ;;  %v338_v8 = vld [vmem:[%s2802_s1 + $0x120] sm:$0xff]  ;;  %v424_v15 = vsel %vm273_vm1, %v2340_v6, %v423_v2  ;;  %v304_v6 = vld [vmem:[%s2802_s1 + $0x10] sm:$0xff] }
  0x4b   : > { %1787 = vmatpush3.msra.mxu1 %v341_v7  ;;  %571 = vmatmul.mubr.f32.gmra.mxu0 %v2251_v23  ;;  %v395_v7 = vrot.slane %v1469_v42, 1  ;;  %v318_v31 = vld [vmem:[%s2802_s1 + $0x80] sm:$0xff]  ;;  %v247_v42 = vsel %vm244_vm0, %v245_v27, %v246_v28  ;;  %v1014_v2 = vld [vmem:[%s2802_s1 + $0x3f0] sm:$0xff] }
  0x4c   : > { %1586 = vmatprep.subr.mxu0 %v323_v38  ;;  %1788 = vmatprep.subr.mxu1 %v340_v41  ;;  %v335_v38 = vld [vmem:[%s2802_s1 + $0x108] sm:$0xff]  ;;  %v334_v47 = vld [vmem:[%s2802_s1 + $0x100] sm:$0xff] }
  0x4d   : > { %1587 = vmatpush3.msra.mxu0 %v307_v30  ;;  %1789 = vmatpush3.msra.mxu1 %v340_v41  ;;  %v396_v25 = vsel %vm244_vm0, %v2337_v4, %v395_v7  ;;  %v336_v4 = vld [vmem:[%s2802_s1 + $0x110] sm:$0xff]  ;;  %v274_v41 = vrot.slane %v220_v17, 2  ;;  %v275_v30 = vrot.slane %v2457_v18, 2  ;;  %v249_v7 = vsel %vm244_vm0, %v246_v28, %v248_v49  ;;  %v1011_v28 = vld [vmem:[%s2802_s1 + $0x3d8] sm:$0xff] }
  0x4e   : > { %1588 = vmatprep.subr.mxu0 %v322_v54  ;;  %1790 = vmatprep.subr.mxu1 %v339_v58  ;;  %v277_v54 = vrot.slane %v222_v35, 2  ;;  %v1006_v49 = vld [vmem:[%s2802_s1 + $0x3b0] sm:$0xff] }
  0x4f   : > { %575 = vmatprep.mubr.f32.mxu0 %v2424_v60  ;;  %1589 = vmatpush3.msra.mxu0 %v306_v1  ;;  %v276_v1 = vsel %vm273_vm1, %v274_v41, %v275_v30  ;;  %v993_v41 = vld [vmem:[%s2802_s1 + $0x348] sm:$0xff] }
  0x50   : > { %1791 = vmatpush3.msra.mxu1 %v339_v58  ;;  %576 = vmatmul.mubr.f32.gmra.mxu0 %v2307_v50  ;;  %v999_v58 = vld [vmem:[%s2802_s1 + $0x378] sm:$0xff] }
  0x51   : > { %1590 = vmatprep.subr.mxu0 %v321_v3  ;;  %1792 = vmatprep.subr.mxu1 %v338_v8  ;;  %v1031_v3 = vld [vmem:[%s2802_s1 + $0x478] sm:$0xff] }
  0x52   : > { %1767 = vmatprep.mubr.f32.mxu1 %v2444_v11  ;;  %1591 = vmatpush3.msra.mxu0 %v305_v13  ;;  %v998_v13 = vld [vmem:[%s2802_s1 + $0x370] sm:$0xff] }
  0x53   : > { %1793 = vmatpush3.msra.mxu1 %v338_v8  ;;  %1592 = vmatprep.subr.mxu0 %v320_v16  ;;  %v278_v8 = vsel %vm273_vm1, %v275_v30, %v277_v54  ;;  %v1030_v16 = vld [vmem:[%s2802_s1 + $0x470] sm:$0xff]  ;;  %v992_v30 = vld [vmem:[%s2802_s1 + $0x340] sm:$0xff]  ;;  %v1023_v54 = vld [vmem:[%s2802_s1 + $0x438] sm:$0xff] }
  0x54   : > { %1768 = vmatmul.mubr.f32.gmra.mxu1 %v424_v15  ;;  %1794 = vmatprep.subr.mxu1 %v337_v19  ;;  %v1013_v15 = vld [vmem:[%s2802_s1 + $0x3e8] sm:$0xff] }
  0x55   : > { %580 = vmatprep.mubr.f32.mxu0 %v396_v25  ;;  %1593 = vmatpush3.msra.mxu0 %v304_v6  ;;  %v1012_v25 = vld [vmem:[%s2802_s1 + $0x3e0] sm:$0xff]  ;;  %v1029_v6 = vld [vmem:[%s2802_s1 + $0x468] sm:$0xff] }
  0x56   : > { %1795 = vmatpush3.msra.mxu1 %v337_v19  ;;  %581 = vmatmul.mubr.f32.gmra.mxu0 %v2310_v52  ;;  %v225_v19 = vld [vmem:[%s2097_s26 + $0x28] sm:$0x3] }
  0x57   : > { %1594 = vmatprep.subr.mxu0 %v319_v26  ;;  %1796 = vmatprep.subr.mxu1 %v336_v4  ;;  %v996_v26 = vld [vmem:[%s2802_s1 + $0x360] sm:$0xff]  ;;  %v253_v27 = vrot.slane %v225_v19, 1 }
  0x58   : > { %1595 = vmatpush3.msra.mxu0 %v303_v29  ;;  %1797 = vmatpush3.msra.mxu1 %v336_v4  ;;  %v995_v4 = vld [vmem:[%s2802_s1 + $0x358] sm:$0xff]  ;;  %v1010_v29 = vld [vmem:[%s2802_s1 + $0x3d0] sm:$0xff] }
  0x59   : > { %1596 = vmatprep.subr.mxu0 %v318_v31  ;;  %1798 = vmatprep.subr.mxu1 %v335_v38  ;;  %v282_v31 = vrot.slane %v225_v19, 2  ;;  %v254_v35 = vsel %vm244_vm0, %v2134_v43, %v253_v27  ;;  %v1026_v43 = vld [vmem:[%s2802_s1 + $0x450] sm:$0xff]  ;;  %v1001_v19 = vld [vmem:[%s2802_s1 + $0x388] sm:$0xff]  ;;  %v984_v27 = vld [vmem:[%s2802_s1 + $0x300] sm:$0xff] }
  0x5a   : > { %1597 = vmatpush3.msra.mxu0 %v302_v40  ;;  %755 = vmatprep.mubr.f32.mxu0 %v247_v42  ;;  %v1009_v40 = vld [vmem:[%s2802_s1 + $0x3c8] sm:$0xff]  ;;  %v1024_v42 = vld [vmem:[%s2802_s1 + $0x440] sm:$0xff] }
  0x5b   : > { %1799 = vmatpush3.msra.mxu1 %v335_v38  ;;  %756 = vmatmul.mubr.f32.vlgmr.msra.gmra.mxu0 %v220_v17  ;;  %v997_v17 = vld [vmem:[%s2802_s1 + $0x368] sm:$0xff]  ;;  %v994_v38 = vld [vmem:[%s2802_s1 + $0x350] sm:$0xff] }
  0x5c   : > { %1800 = vmatprep.subr.mxu1 %v334_v47  ;;  %1646 = vmatprep.subr.mxu0 %v1015_v55  ;;  %v990_v55 = vld [vmem:[%s2802_s1 + $0x330] sm:$0xff] }
  0x5d   : > { %1801 = vmatpush3.msra.mxu1 %v334_v47  ;;  %1647 = vmatpush3.msra.mxu0 %v999_v58  ;;  %v991_v47 = vld [vmem:[%s2802_s1 + $0x338] sm:$0xff]  ;;  %v1005_v58 = vld [vmem:[%s2802_s1 + $0x3a8] sm:$0xff] }
  0x5e   : > { %1802 = vmatprep.mubr.f32.mxu1 %v276_v1  ;;  %1648 = vmatprep.subr.mxu0 %v1014_v2  ;;  %v1022_v1 = vld [vmem:[%s2802_s1 + $0x430] sm:$0xff]  ;;  %v989_v2 = vld [vmem:[%s2802_s1 + $0x328] sm:$0xff] }
  0x5f   : > { %1814 = vmatprep.subr.mxu1 %v1031_v3  ;;  %760 = vmatprep.mubr.f32.mxu0 %v249_v7  ;;  %v988_v7 = vld [vmem:[%s2802_s1 + $0x320] sm:$0xff] }
  0x60   : > { %1803 = vmatmul.mubr.f32.vlgmr.msra.gmra.mxu1 %v278_v8  ;;  %1649 = vmatpush3.msra.mxu0 %v998_v13  ;;  %v1003_v8 = vld [vmem:[%s2802_s1 + $0x398] sm:$0xff] }
  0x61   : > { %1815 = vmatpush3.msra.mxu1 %v1031_v3  ;;  %761 = vmatmul.mubr.f32.gmra.mxu0 %v2457_v18  ;;  %v1028_v18 = vld [vmem:[%s2802_s1 + $0x460] sm:$0xff]  ;;  %v1021_v3 = vld [vmem:[%s2802_s1 + $0x428] sm:$0xff]  ;;  %v987_v13 = vld [vmem:[%s2802_s1 + $0x318] sm:$0xff] }
  0x62   : > { %1650 = vmatprep.subr.mxu0 %v1013_v15  ;;  %1816 = vmatprep.subr.mxu1 %v1030_v16  ;;  %v1002_v15 = vld [vmem:[%s2802_s1 + $0x390] sm:$0xff] }
  0x63   : > { %1651 = vmatpush3.msra.mxu0 %v997_v17  ;;  %1817 = vmatpush3.msra.mxu1 %v1030_v16  ;;  %v1019_v16 = vld [vmem:[%s2802_s1 + $0x418] sm:$0xff]  ;;  %v986_v17 = vld [vmem:[%s2802_s1 + $0x310] sm:$0xff] }
  0x64   : > { %1652 = vmatprep.subr.mxu0 %v1012_v25  ;;  %1818 = vmatprep.subr.mxu1 %v1029_v6  ;;  %v1018_v25 = vld [vmem:[%s2802_s1 + $0x410] sm:$0xff] }
  0x65   : > { %765 = vmatprep.mubr.f32.mxu0 %v2157_v51  ;;  %1653 = vmatpush3.msra.mxu0 %v996_v26  ;;  %v1027_v51 = vld [vmem:[%s2802_s1 + $0x458] sm:$0xff]  ;;  %v1017_v26 = vld [vmem:[%s2802_s1 + $0x408] sm:$0xff] }
  0x66   : > { %1819 = vmatpush3.msra.mxu1 %v1029_v6  ;;  %766 = vmatmul.mubr.f32.gmra.mxu0 %v2115_v36  ;;  %v283_v36 = vsel %vm273_vm1, %v2161_v53, %v282_v31  ;;  %v1008_v53 = vld [vmem:[%s2802_s1 + $0x3c0] sm:$0xff]  ;;  %v985_v6 = vld [vmem:[%s2802_s1 + $0x308] sm:$0xff] }
  0x67   : > { %1654 = vmatprep.subr.mxu0 %v1011_v28  ;;  %1820 = vmatprep.subr.mxu1 %v1028_v18  ;;  %v1016_v28 = vld [vmem:[%s2802_s1 + $0x400] sm:$0xff] }
  0x68   : > { %1655 = vmatpush3.msra.mxu0 %v995_v4  ;;  %1821 = vmatpush3.msra.mxu1 %v1028_v18 }
  0x69   : > { %1656 = vmatprep.subr.mxu0 %v1010_v29  ;;  %1822 = vmatprep.subr.mxu1 %v1027_v51 }
  0x6a   : > { %770 = vmatprep.mubr.f32.mxu0 %v254_v35  ;;  %1805 = vmatprep.mubr.f32.mxu1 %v2175_v59  ;;  %v1025_v59 = vld [vmem:[%s2802_s1 + $0x448] sm:$0xff] }
  0x6b   : > { %1657 = vmatpush3.msra.mxu0 %v994_v38  ;;  %1823 = vmatpush3.msra.mxu1 %v1027_v51 }
  0x6c   : > { %771 = vmatmul.mubr.f32.gmra.mxu0 %v2118_v37  ;;  %1806 = vmatmul.mubr.f32.gmra.mxu1 %v283_v36  ;;  %v1007_v37 = vld [vmem:[%s2802_s1 + $0x3b8] sm:$0xff] }
  0x6d   : > { %1658 = vmatprep.subr.mxu0 %v1009_v40  ;;  %1824 = vmatprep.subr.mxu1 %v1026_v43 }
  0x6e   : > { %1659 = vmatpush3.msra.mxu0 %v993_v41  ;;  %1825 = vmatpush3.msra.mxu1 %v1026_v43 }
  0x6f   : > { %1660 = vmatprep.subr.mxu0 %v1008_v53  ;;  %1826 = vmatprep.subr.mxu1 %v1025_v59 }
  0x70   : > { %775 = vmatprep.mubr.f32.mxu0 %v2228_v14  ;;  %1661 = vmatpush3.msra.mxu0 %v992_v30 }
  0x71   : > { %1827 = vmatpush3.msra.mxu1 %v1025_v59  ;;  %776 = vmatmul.mubr.f32.gmra.mxu0 %v2181_v61 }
  0x72   : > { %1662 = vmatprep.subr.mxu0 %v1007_v37  ;;  %1828 = vmatprep.subr.mxu1 %v1024_v42 }
  0x73   : > { %1663 = vmatpush3.msra.mxu0 %v991_v47  ;;  %1829 = vmatpush3.msra.mxu1 %v1024_v42 }
  0x74   : > { %1664 = vmatprep.subr.mxu0 %v1006_v49  ;;  %1830 = vmatprep.subr.mxu1 %v1023_v54 }
  0x75   : > { %780 = vmatprep.mubr.f32.mxu0 %v2292_v45  ;;  %1808 = vmatprep.mubr.f32.mxu1 %v2242_v20  ;;  %v1004_v45 = vld [vmem:[%s2802_s1 + $0x3a0] sm:$0xff] }
  0x76   : > { %1665 = vmatpush3.msra.mxu0 %v990_v55  ;;  %1831 = vmatpush3.msra.mxu1 %v1023_v54 }
  0x77   : > { %781 = vmatmul.mubr.f32.gmra.mxu0 %v2184_v62  ;;  %1809 = vmatmul.mubr.f32.gmra.mxu1 %v2296_v46  ;;  %v1020_v46 = vld [vmem:[%s2802_s1 + $0x420] sm:$0xff] }
  0x78   : > { %1666 = vmatprep.subr.mxu0 %v1005_v58  ;;  %1832 = vmatprep.subr.mxu1 %v1022_v1 }
  0x79   : > { %1667 = vmatpush3.msra.mxu0 %v989_v2  ;;  %1833 = vmatpush3.msra.mxu1 %v1022_v1 }
  0x7a   : > { %1668 = vmatprep.subr.mxu0 %v1004_v45  ;;  %1834 = vmatprep.subr.mxu1 %v1021_v3 }
  0x7b   : > { %785 = vmatprep.mubr.f32.mxu0 %v2304_v48  ;;  %1669 = vmatpush3.msra.mxu0 %v988_v7 }
  0x7c   : > { %1835 = vmatpush3.msra.mxu1 %v1021_v3  ;;  %786 = vmatmul.mubr.f32.gmra.mxu0 %v2248_v22 }
  0x7d   : > { %1670 = vmatprep.subr.mxu0 %v1003_v8  ;;  %1836 = vmatprep.subr.mxu1 %v1020_v46 }
  0x7e   : > { %1671 = vmatpush3.msra.mxu0 %v987_v13  ;;  %1837 = vmatpush3.msra.mxu1 %v1020_v46 }
  0x7f   : > { %1672 = vmatprep.subr.mxu0 %v1002_v15  ;;  %1838 = vmatprep.subr.mxu1 %v1019_v16 }
  0x80   : > { %790 = vmatprep.mubr.f32.mxu0 %v2349_v9  ;;  %1811 = vmatprep.mubr.f32.mxu1 %v2321_v57  ;;  %v1000_v9 = vld [vmem:[%s2802_s1 + $0x380] sm:$0xff] }
  0x81   : > { %1673 = vmatpush3.msra.mxu0 %v986_v17  ;;  %1839 = vmatpush3.msra.mxu1 %v1019_v16 }
  0x82   : > { %791 = vmatmul.mubr.f32.gmra.mxu0 %v2251_v23  ;;  %1812 = vmatmul.mubr.f32.gmra.mxu1 %v2353_v10 }
  0x83   : > { %1674 = vmatprep.subr.mxu0 %v1001_v19  ;;  %1840 = vmatprep.subr.mxu1 %v1018_v25 }
  0x84   : > { %1675 = vmatpush3.msra.mxu0 %v985_v6  ;;  %1841 = vmatpush3.msra.mxu1 %v1018_v25 }
  0x85   : > { %1676 = vmatprep.subr.mxu0 %v1000_v9  ;;  %1842 = vmatprep.subr.mxu1 %v1017_v26 }
  0x86   : > { %1677 = vmatpush3.msra.mxu0 %v984_v27  ;;  %1096 = vmatprep.mubr.f32.mxu0 %v2228_v14 }
  0x87   : > { %1843 = vmatpush3.msra.mxu1 %v1017_v26  ;;  %1097 = vmatmul.mubr.f32.vlgmr.msra.gmra.mxu0 %v2181_v61 }
  0x88   : > { %1844 = vmatprep.subr.mxu1 %v1016_v28  ;;  %1846 = vmatprep.mubr.f32.mxu1 %v2242_v20 }
  0x89   : > { %1845 = vmatpush3.msra.mxu1 %v1016_v28  ;;  %1101 = vmatprep.mubr.f32.mxu0 %v2378_v33 }
  0x8a   : > { %1847 = vmatmul.mubr.f32.vlgmr.msra.gmra.mxu1 %v2374_v32 }
  0x8b   : > { %1849 = vmatprep.mubr.f32.mxu1 %v2321_v57  ;;  %1102 = vmatmul.mubr.f32.gmra.mxu0 %v2184_v62 }
  0x8c   : > { %1106 = vmatprep.mubr.f32.mxu0 %v2304_v48 }
  0x8e   : > { %1850 = vmatmul.mubr.f32.gmra.mxu1 %v2382_v34 }
  0x8f   : > { %1852 = vmatprep.mubr.f32.mxu1 %v2444_v11  ;;  %1107 = vmatmul.mubr.f32.gmra.mxu0 %v2248_v22 }
  0x90   : > { %1111 = vmatprep.mubr.f32.mxu0 %v2390_v12 }
  0x92   : > { %1853 = vmatmul.mubr.f32.gmra.mxu1 %v2394_v5 }
  0x93   : > { %1855 = vmatprep.mubr.f32.mxu1 %v2416_v56  ;;  %1112 = vmatmul.mubr.f32.gmra.mxu0 %v2251_v23 }
  0x94   : > { %1116 = vmatprep.mubr.f32.mxu0 %v2424_v60 }
  0x96   : > { %1856 = vmatmul.mubr.f32.gmra.mxu1 %v2427_v63 }
  0x97   : > { %1117 = vmatmul.mubr.f32.gmra.mxu0 %v2307_v50 }
  0x98   : > { %1121 = vmatprep.mubr.f32.mxu0 %v2398_v39 }
  0x9b   : > { %1122 = vmatmul.mubr.f32.gmra.mxu0 %v2310_v52 }
  0x9c   : > { %1126 = vmatprep.mubr.f32.mxu0 %v2409_v44 }
  0x9f   : > { %1127 = vmatmul.mubr.f32.gmra.mxu0 %v2360_v21 }
  0xa0   : > { %1131 = vmatprep.mubr.f32.mxu0 %v2430_v0 }
  0xa3   : > { %1132 = vmatmul.mubr.f32.gmra.mxu0 %v2363_v24 }
  0xef   : > { %v1518_v61 = vpop.f32.mrf.mxu0 }
  0xf1   : > { %v1519_v62 = vpop.f32.mrf.mxu0 }
  0xf2   : > { %v1760_v12 = vpop.f32.mrf.mxu1  ;;  %v1520_v58 = vadd.f32 %v1519_v62, %v1518_v61 }
  0xf4   : > { %v652_v39 = vpop.f32.mrf.mxu1 }
  0xf5   : > { %v1521_v14 = vpop.f32.mrf.mxu0  ;;  %v653_v3 = vadd.f32 %v1520_v58, %v652_v39 }
  0xf7   : > { %v1522_v20 = vpop.f32.mrf.mxu0 }
  0xf8   : > { %v1523_v7 = vadd.f32 %v1522_v20, %v1521_v14 }
  0xfa   : > { %v1524_v22 = vpop.f32.mrf.mxu0  ;;  %v658_v19 = vadd.f32 %v1760_v12, %v1523_v7 }
  0xfc   : > { %v1525_v23 = vpop.f32.mrf.mxu0 }
  0xfd   : > { %v1526_v25 = vadd.f32 %v1525_v23, %v1524_v22 }
  0xfe   : > { %v2707_v56 = vpop.f32.mrf.mxu1 }
 0x100   : > { %v2687_v48 = vpop.f32.mrf.mxu0  ;;  %v662_v63 = vpop.f32.mrf.mxu1 }
 0x102   : > { %v2689_v50 = vpop.f32.mrf.mxu0 }
 0x103   : > { %v1529_v22 = vadd.f32 %v2689_v50, %v2687_v48 }
 0x105   : > { %v2691_v57 = vpop.f32.mrf.mxu0  ;;  %v668_v58 = vadd.f32 %v2707_v56, %v1529_v22 }
 0x107   : > { %v2693_v52 = vpop.f32.mrf.mxu0 }
 0x109   : > { %v2709_v11 = vpop.f32.mrf.mxu1 }
 0x10b   : > { %v2695_v10 = vpop.f32.mrf.mxu0  ;;  %v2711_v29 = vpop.f32.mrf.mxu1 }
 0x10d   : > { %v2697_v21 = vpop.f32.mrf.mxu0 }
 0x110   : > { %v2699_v32 = vpop.f32.mrf.mxu0 }
 0x112   : > { %v2701_v24 = vpop.f32.mrf.mxu0 }
 0x114   : > { %v2713_v31 = vpop.f32.mrf.mxu1 }
 0x116   : > { %v2703_v33 = vpop.f32.mrf.mxu0  ;;  %v2715_v38 = vpop.f32.mrf.mxu1 }
 0x118   : > { %v2705_v34 = vpop.f32.mrf.mxu0 }
 0x11b   : > { %v1598_v5 = vpop.f32.mrf.mxu0 }
 0x11d   : > { %v1599_v44 = vpop.f32.mrf.mxu0 }
 0x11e   : > { %v1600_v45 = vadd.f32 %v1599_v44, %v1598_v5  ;;  %v663_v5 = vadd.f32 %v1526_v25, %v662_v63 }
 0x120   : > { %v1804_v36 = vpop.f32.mrf.mxu1  ;;  %v758_v15 = vadd.f32 %v1600_v45, %v653_v3  ;;  %v1532_v45 = vadd.f32 %v2693_v52, %v2691_v57 }
 0x121   : > { %v1601_v60 = vpop.f32.mrf.mxu0 }
 0x122   : > { %v862_v41 = vpop.f32.mrf.mxu1 }
 0x123   : > { %v1602_v0 = vpop.f32.mrf.mxu0  ;;  %v863_v28 = vadd.f32 %v862_v41, %v758_v15  ;;  %v1535_v15 = vadd.f32 %v2697_v21, %v2695_v10 }
 0x124   : > { %v1603_v13 = vadd.f32 %v1602_v0, %v1601_v60 }
 0x125   : > { %v678_v25 = vadd.f32 %v2709_v11, %v1535_v15 }
 0x126   : > { %v1604_v18 = vpop.f32.mrf.mxu0  ;;  %v763_v27 = vadd.f32 %v1603_v13, %v658_v19  ;;  %v673_v13 = vadd.f32 %v1532_v45, %v2711_v29  ;;  %v1538_v29 = vadd.f32 %v2701_v24, %v2699_v32 }
 0x128   : > { %v1605_v4 = vpop.f32.mrf.mxu0  ;;  %v868_v44 = vadd.f32 %v1804_v36, %v763_v27  ;;  %v683_v32 = vadd.f32 %v1538_v29, %v2715_v38 }
 0x129   : > { %v1606_v61 = vadd.f32 %v1605_v4, %v1604_v18 }
 0x12b   : > { %v768_v0 = vadd.f32 %v1606_v61, %v663_v5 }
 0x12c   : > { %v1607_v51 = vpop.f32.mrf.mxu0  ;;  %v2719_v59 = vpop.f32.mrf.mxu1 }
 0x12e   : > { %v1608_v35 = vpop.f32.mrf.mxu0  ;;  %v872_v37 = vpop.f32.mrf.mxu1 }
 0x12f   : > { %v1609_v60 = vadd.f32 %v1608_v35, %v1607_v51  ;;  %v873_v50 = vadd.f32 %v872_v37, %v768_v0 }
 0x131   : > { %v1610_v40 = vpop.f32.mrf.mxu0  ;;  %v773_v48 = vadd.f32 %v1609_v60, %v668_v58 }
 0x133   : > { %v1611_v43 = vpop.f32.mrf.mxu0  ;;  %v878_v57 = vadd.f32 %v2719_v59, %v773_v48 }
 0x137   : > { %v2717_v53 = vpop.f32.mrf.mxu0  ;;  %v2726_v47 = vpop.f32.mrf.mxu1 }
 0x139   : > { %v2721_v30 = vpop.f32.mrf.mxu0  ;;  %v2730_v54 = vpop.f32.mrf.mxu1 }
 0x13a   : > { %v1615_v52 = vadd.f32 %v2721_v30, %v2717_v53  ;;  %v1541_v30 = vadd.f32 %v2705_v34, %v2703_v33 }
 0x13c   : > { %v2724_v42 = vpop.f32.mrf.mxu0  ;;  %v688_v34 = vadd.f32 %v2713_v31, %v1541_v30 }
 0x13e   : > { %v2728_v49 = vpop.f32.mrf.mxu0 }
 0x13f   : > { %v1618_v59 = vadd.f32 %v2728_v49, %v2724_v42 }
 0x141   : > { %v788_v49 = vadd.f32 %v1618_v59, %v683_v32 }
 0x142   : > { %v2732_v55 = vpop.f32.mrf.mxu0  ;;  %v2734_v1 = vpop.f32.mrf.mxu1 }
 0x144   : > { %v2736_v2 = vpop.f32.mrf.mxu0  ;;  %v2739_v8 = vpop.f32.mrf.mxu1 }
 0x147   : > { %v1678_v46 = vpop.f32.mrf.mxu0 }
 0x149   : > { %v1679_v16 = vpop.f32.mrf.mxu0 }
 0x14a   : > { %v1848_v17 = vpop.f32.mrf.mxu1  ;;  %v1680_v6 = vadd.f32 %v1679_v16, %v1678_v46  ;;  %v1612_v46 = vadd.f32 %v1611_v43, %v1610_v40 }
 0x14b   : > { %v1681_v9 = vpop.f32.mrf.mxu0 }
 0x14c   : > { %v1203_v26 = vpop.f32.mrf.mxu1  ;;  %v778_v37 = vadd.f32 %v1612_v46, %v673_v13 }
 0x14d   : > { %v1204_v62 = vadd.f32 %v1680_v6, %v1203_v26  ;;  %v1682_v14 = vpop.f32.mrf.mxu0 }
 0x14e   : > { %v1851_v20 = vpop.f32.mrf.mxu1  ;;  %v1683_v12 = vadd.f32 %v1682_v14, %v1681_v9  ;;  %v783_v9 = vadd.f32 %v1615_v52, %v678_v25  ;;  %v883_v26 = vadd.f32 %v2730_v54, %v778_v37 }
 0x14f   : > { %v1242_v23 = vadd.f32 %v1204_v62, %v863_v28  ;;  %v1684_v39 = vpop.f32.mrf.mxu0  ;;  %v1621_v62 = vadd.f32 %v2736_v2, %v2732_v55 }
 0x150   : > { %v1209_v18 = vadd.f32 %v1848_v17, %v1683_v12  ;;  %v1213_v41 = vpop.f32.mrf.mxu1  ;;  %v888_v42 = vadd.f32 %v2726_v47, %v783_v9  ;;  %v893_v47 = vadd.f32 %v2739_v8, %v788_v49 }
 0x151   : > { %1250 = vst [vmem:[%s2744_s27] sm:$0xff] %v1242_v23  ;;  %v1685_v4 = vpop.f32.mrf.mxu0  ;;  %v1271_v54 = vmul.f32 %v1242_v23, %v1242_v23  ;;  %v793_v55 = vadd.f32 %v1621_v62, %v688_v34 }
 0x152   : > { %v1243_v63 = vadd.f32 %v1209_v18, %v868_v44  ;;  %v1686_v3 = vadd.f32 %v1685_v4, %v1684_v39  ;;  %v1854_v35 = vpop.f32.mrf.mxu1 }
 0x153   : > { %v1687_v7 = vpop.f32.mrf.mxu0  ;;  %v898_v48 = vadd.f32 %v2734_v1, %v793_v55 }
 0x154   : > { %1251 = vst [vmem:[%s2744_s27 + $0x8] sm:$0xff] %v1243_v63  ;;  %v1214_v36 = vadd.f32 %v1686_v3, %v1213_v41  ;;  %v1223_v19 = vpop.f32.mrf.mxu1  ;;  %v1272_v27 = vmul.f32 %v1243_v63, %v1243_v63  ;;  %v1258_v5 = vadd.f32 %v1243_v63, %v1242_v23 }
 0x155   : > { %v1688_v51 = vpop.f32.mrf.mxu0 }
 0x156   : > { %v1244_v56 = vadd.f32 %v1214_v36, %v873_v50  ;;  %v1689_v16 = vadd.f32 %v1688_v51, %v1687_v7  ;;  %v1857_v28 = vpop.f32.mrf.mxu1  ;;  %v1279_v22 = vadd.f32 %v1272_v27, %v1271_v54 }
 0x157   : > { %v1690_v17 = vpop.f32.mrf.mxu0 }
 0x158   : > { %1252 = vst [vmem:[%s2744_s27 + $0x10] sm:$0xff] %v1244_v56  ;;  %v1219_v40 = vadd.f32 %v1851_v20, %v1689_v16  ;;  %v1273_v14 = vmul.f32 %v1244_v56, %v1244_v56  ;;  %v1233_v39 = vpop.f32.mrf.mxu1  ;;  %v1259_v44 = vadd.f32 %v1258_v5, %v1244_v56 }
 0x159   : > { %v1691_v43 = vpop.f32.mrf.mxu0 }
 0x15a   : > { %v1245_v10 = vadd.f32 %v1219_v40, %v878_v57  ;;  %v1692_v21 = vadd.f32 %v1691_v43, %v1690_v17  ;;  %v1280_v2 = vadd.f32 %v1279_v22, %v1273_v14 }
 0x15b   : > { %v1693_v6 = vpop.f32.mrf.mxu0 }
 0x15c   : > { %1253 = vst [vmem:[%s2744_s27 + $0x18] sm:$0xff] %v1245_v10  ;;  %v1224_v53 = vadd.f32 %v1692_v21, %v1223_v19  ;;  %v1274_v12 = vmul.f32 %v1245_v10, %v1245_v10  ;;  %v1260_v4 = vadd.f32 %v1259_v44, %v1245_v10 }
 0x15d   : > { %v1694_v11 = vpop.f32.mrf.mxu0 }
 0x15e   : > { %v1246_v24 = vadd.f32 %v1224_v53, %v883_v26  ;;  %v1695_v61 = vadd.f32 %v1694_v11, %v1693_v6  ;;  %v1281_v58 = vadd.f32 %v1280_v2, %v1274_v12 }
 0x15f   : > { %v1696_v20 = vpop.f32.mrf.mxu0 }
 0x160   : > { %1254 = vst [vmem:[%s2744_s27 + $0x20] sm:$0xff] %v1246_v24  ;;  %v1229_v33 = vadd.f32 %v1854_v35, %v1695_v61  ;;  %v1275_v23 = vmul.f32 %v1246_v24, %v1246_v24  ;;  %v1261_v45 = vadd.f32 %v1260_v4, %v1246_v24 }
 0x161   : > { %v1697_v38 = vpop.f32.mrf.mxu0 }
 0x162   : > { %v1247_v60 = vadd.f32 %v1229_v33, %v888_v42  ;;  %v1698_v0 = vadd.f32 %v1697_v38, %v1696_v20  ;;  %v1282_v50 = vadd.f32 %v1281_v58, %v1275_v23 }
 0x163   : > { %v1699_v18 = vpop.f32.mrf.mxu0 }
 0x164   : > { %1255 = vst [vmem:[%s2744_s27 + $0x28] sm:$0xff] %v1247_v60  ;;  %v1234_v41 = vadd.f32 %v1698_v0, %v1233_v39  ;;  %v1276_v63 = vmul.f32 %v1247_v60, %v1247_v60  ;;  %v1262_v46 = vadd.f32 %v1261_v45, %v1247_v60 }
 0x165   : > { %v1700_v31 = vpop.f32.mrf.mxu0 }
 0x166   : > { %v1248_v3 = vadd.f32 %v1234_v41, %v893_v47  ;;  %v1701_v7 = vadd.f32 %v1700_v31, %v1699_v18  ;;  %v1283_v35 = vadd.f32 %v1282_v50, %v1276_v63 }
 0x168   : > { %1256 = vst [vmem:[%s2744_s27 + $0x30] sm:$0xff] %v1248_v3  ;;  %v1277_v8 = vmul.f32 %v1248_v3, %v1248_v3  ;;  %v1239_v36 = vadd.f32 %v1857_v28, %v1701_v7  ;;  %v1263_v51 = vadd.f32 %v1262_v46, %v1248_v3 }
 0x16a   : > { %v1249_v13 = vadd.f32 %v1239_v36, %v898_v48  ;;  %v1284_v15 = vadd.f32 %v1283_v35, %v1277_v8 }
 0x16c   : > { %1257 = vst [vmem:[%s2744_s27 + $0x38] sm:$0xff] %v1249_v13  ;;  %v1264_v56 = vadd.f32 %v1263_v51, %v1249_v13  ;;  %v1278_v16 = vmul.f32 %v1249_v13, %v1249_v13 }
 0x16e   : > { %v1265_v17 = vrot.slane %v1264_v56, 4  ;;  %v1285_v57 = vadd.f32 %v1284_v15, %v1278_v16 }
 0x170   : > { %v1266_v52 = vadd.f32 %v1265_v17, %v1264_v56  ;;  %v1286_v1 = vrot.slane %v1285_v57, 4 }
 0x172   : > { %v1267_v37 = vrot.slane %v1266_v52, 2  ;;  %v1287_v40 = vadd.f32 %v1286_v1, %v1285_v57 }
 0x174   : > { %v1268_v43 = vadd.f32 %v1267_v37, %v1266_v52  ;;  %v1288_v19 = vrot.slane %v1287_v40, 2 }
 0x176   : > { %v1269_v25 = vrot.slane %v1268_v43, 1  ;;  %v1289_v29 = vadd.f32 %v1288_v19, %v1287_v40 }
 0x178   : > { %v1290_v10 = vrot.slane %v1289_v29, 1  ;;  %v1270_v21 = vadd.f32 %v1269_v25, %v1268_v43 }
 0x17a   : > { %v1291_v6 = vadd.f32 %v1290_v10, %v1289_v29 }
 0x17c   : > { %v1293_v9 = vsel %vm1292_vm2, %v1270_v21, %v1291_v6 }
 0x17d   : > { %1294 = vst [vmem:[%s216_s30] sm:$0x3] %v1293_v9 }
 0x17e PF: > { %s14_s16 = sadd.s32 1, %s1937_s16   ;;  %s2805_s12 = smov %s1929_s14 }
 0x17f   : > { %p11_p8 = scmp.ge.s32.totalorder %s14_s16, 10   ;;  %s2806_s13 = smov %s1933_s15 }
 0x180   : > { %s2807_s14 = smov %s2810_s17  ;;  %s2808_s15 = smov %s2814_s18 }
 0x181   :  { %13 = sbr.rel (!%p11_p8) target bundleno = 3 (0x3), region = 73 }

</bundles_post_ra>
